<compile_context>
chip_gen: v7x
topology: tpu7x:2x2x1
jax: 0.10.0
libtpu: 0.0.40
codegen_flags: <defaults>
</compile_context>

<pallas_src>
import functools

import jax
import jax.numpy as jnp
from jax import lax
from jax.experimental import pallas as pl
from jax.experimental.pallas import tpu as pltpu


_VMEM_LIMIT = 48 * 1024 * 1024  # explicit scoped-VMEM cap (safe on v5e/v6e/v7x)


def _rup(a, m):
    return -(-a // m) * m


def _pick_boh(OH, OW, cap_lanes=512):
    """Output-row band height (divisor of OH). Multi-band only when the band's
    flattened lane width BOH*OW is a multiple of 128 (BlockSpec constraint)."""
    aligned = [d for d in range(1, OH) if OH % d == 0 and (d * OW) % 128 == 0]
    under = [d for d in aligned if d * OW <= cap_lanes]
    if under:
        return max(under)
    if aligned and OH * OW > cap_lanes:
        return min(aligned)
    return OH


def _pick_lane_tile(total, cap=1024):
    """Largest multiple-of-128 divisor of `total` that is <= cap (else total)."""
    if total % 128 != 0:
        return total
    cands = [t for t in range(128, min(cap, total) + 1, 128) if total % t == 0]
    return max(cands) if cands else total


# ----------------------------------------------------------------------------
# Kernel 1: conv (channel-major folded-tap MXU matmul) + BN partial statistics
# ----------------------------------------------------------------------------
def _conv_stats_kernel(x_ref, w_ref, y_ref, stats_ref, *,
                       KH, KW, SH, SW, C, OW, BOH, IBH, CK, CKp, F):
    b = pl.program_id(1)
    row0 = pl.multiple_of(b * (BOH * SH), BOH * SH)

    # Band of padded input rows needed by this output-row band (halo included).
    xb = x_ref[0, :, pl.ds(row0, IBH), :]                    # (C, IBH, Wp)

    # Folded-tap patch tensor, channel/tap-major on sublanes.
    taps = []
    for kh in range(KH):
        for kw in range(KW):
            taps.append(
                lax.slice(xb, (0, kh, kw),
                          (C, kh + (BOH - 1) * SH + 1, kw + (OW - 1) * SW + 1),
                          (1, SH, SW)))                      # (C, BOH, OW)
    if CKp > CK:
        taps.append(jnp.zeros((CKp - CK, BOH, OW), xb.dtype))  # pad contraction
    p3 = taps[0] if len(taps) == 1 else jnp.concatenate(taps, axis=0)  # (CKp, BOH, OW)

    # Flatten output space onto lanes: (CKp, BOH*OW), lane-dense.
    cols = [p3[:, oh, :] for oh in range(BOH)]               # BOH x (CKp, OW)
    patches = cols[0] if len(cols) == 1 else jnp.concatenate(cols, axis=1)

    # Channel-major conv: (F8, CKp) @ (CKp, BOH*OW) -> (F8, BOH*OW), f32 acc.
    acc = jnp.dot(w_ref[...], patches, preferred_element_type=jnp.float32)

    y_ref[0] = acc[:F, :].astype(y_ref.dtype)                # lane-dense store

    # Per-(sample, band) BN partials from the f32 accumulator, single output.
    s = jnp.sum(acc, axis=1, keepdims=True)                  # (F8, 1)
    ss = jnp.sum(acc * acc, axis=1, keepdims=True)           # (F8, 1)
    stats_ref[0, 0] = jnp.concatenate([s, ss], axis=1)       # (F8, 2)


# ----------------------------------------------------------------------------
# Kernel 2: BN affine apply + ReLU6 (channel-major, lane-dense, no transpose)
# ----------------------------------------------------------------------------
def _bn_act_kernel(y_ref, scale_ref, bias_ref, o_ref, *, if_act):
    y = y_ref[0].astype(jnp.float32)                         # (F, T)
    out = y * scale_ref[...] + bias_ref[...]                 # (F, 1) lane-broadcast
    if if_act:
        out = jnp.clip(out, 0.0, 6.0)                        # relu6
    o_ref[0] = out.astype(o_ref.dtype)


# ----------------------------------------------------------------------------
# Wrapper: ConvBNLayer.forward
# ----------------------------------------------------------------------------
@functools.partial(jax.jit, static_argnames=(
    "stride", "padding", "num_groups", "if_act", "eps", "compute_dtype"))
def conv_bn_layer(x_nchw, weight_oihw, gamma, beta, *, stride, padding,
                  num_groups=1, if_act=True, eps=1e-5,
                  compute_dtype=jnp.bfloat16):
    """ConvBNLayer forward. x_nchw: (N, C, H, W) f32. Returns (N, F, OH, OW) f32."""
    assert num_groups == 1, "only num_groups=1 implemented"

    N, C, H, W = x_nchw.shape
    F, Cw, KH, KW = weight_oihw.shape
    assert Cw == C

    SH = SW = int(stride)
    PH = PW = int(padding)
    Hp, Wp = H + 2 * PH, W + 2 * PW
    OH = (Hp - KH) // SH + 1
    OW = (Wp - KW) // SW + 1
    OHW = OH * OW
    CK = KH * KW * C

    itemsize = jnp.dtype(compute_dtype).itemsize
    pack = 8 * (4 // itemsize)                               # 8 (f32) / 16 (bf16)
    F8 = _rup(F, 8)
    CKp = _rup(CK, pack)

    BOH = _pick_boh(OH, OW)
    NB = OH // BOH
    TOHW = BOH * OW
    IBH = (BOH - 1) * SH + KH                                # input rows per band

    # Spatial zero-pad + cast in a single wrapper pass; NCHW layout is kept.
    x = jnp.pad(x_nchw, ((0, 0), (0, 0), (PH, PH), (PW, PW))).astype(compute_dtype)

    # Weights: OIHW -> (F8, CKp), contraction order (kh, kw, c), zero-padded.
    w = jnp.transpose(weight_oihw, (0, 2, 3, 1)).reshape(F, CK)
    w = jnp.pad(w, ((0, F8 - F), (0, CKp - CK))).astype(compute_dtype)

    conv_kernel = functools.partial(
        _conv_stats_kernel, KH=KH, KW=KW, SH=SH, SW=SW, C=C, OW=OW,
        BOH=BOH, IBH=IBH, CK=CK, CKp=CKp, F=F)

    conv_y, stats = pl.pallas_call(
        conv_kernel,
        grid=(N, NB),
        in_specs=[
            pl.BlockSpec((1, C, Hp, Wp), lambda n, b: (n, 0, 0, 0)),
            pl.BlockSpec((F8, CKp), lambda n, b: (0, 0)),
        ],
        out_specs=[
            pl.BlockSpec((1, F, TOHW), lambda n, b: (n, 0, b)),     # channel-major, unpadded
            pl.BlockSpec((1, 1, F8, 2), lambda n, b: (n, b, 0, 0)),  # merged sum/sumsq
        ],
        out_shape=(
            jax.ShapeDtypeStruct((N, F, OHW), compute_dtype),
            jax.ShapeDtypeStruct((N, NB, F8, 2), jnp.float32),
        ),
        compiler_params=pltpu.CompilerParams(
            dimension_semantics=("parallel", "parallel"),
            vmem_limit_bytes=_VMEM_LIMIT),
    )(x, w)

    # BatchNorm2d (training mode, fresh module): biased batch stats over N,H,W.
    count = N * OHW
    stats_sum = stats.sum(axis=(0, 1))                       # (F8, 2) f32
    ch_sum = stats_sum[:F, 0]
    ch_ssq = stats_sum[:F, 1]
    mean = ch_sum / count
    var = jnp.maximum(ch_ssq / count - mean * mean, 0.0)
    inv_std = lax.rsqrt(var + eps)
    scale = (gamma.astype(jnp.float32) * inv_std).reshape(F, 1)
    bias = (beta.astype(jnp.float32) - mean * gamma.astype(jnp.float32) * inv_std).reshape(F, 1)

    T2 = _pick_lane_tile(OHW)
    out = pl.pallas_call(
        functools.partial(_bn_act_kernel, if_act=if_act),
        grid=(N, OHW // T2),
        in_specs=[
            pl.BlockSpec((1, F, T2), lambda n, t: (n, 0, t)),
            pl.BlockSpec((F, 1), lambda n, t: (0, 0)),
            pl.BlockSpec((F, 1), lambda n, t: (0, 0)),
        ],
        out_specs=pl.BlockSpec((1, F, T2), lambda n, t: (n, 0, t)),
        out_shape=jax.ShapeDtypeStruct((N, F, OHW), jnp.float32),
        compiler_params=pltpu.CompilerParams(
            dimension_semantics=("parallel", "parallel"),
            vmem_limit_bytes=_VMEM_LIMIT),
    )(conv_y, scale, bias)

    return out.reshape(N, F, OH, OW)                         # free metadata reshape


# ----------------------------------------------------------------------------
# Pure-JAX reference (correctness check)
# ----------------------------------------------------------------------------
def _reference(x_nchw, weight_oihw, gamma, beta, *, stride, padding,
               if_act=True, eps=1e-5):
    y = lax.conv_general_dilated(
        x_nchw, weight_oihw, (stride, stride),
        [(padding, padding), (padding, padding)],
        dimension_numbers=("NCHW", "OIHW", "NCHW"))
    mean = y.mean(axis=(0, 2, 3), keepdims=True)
    var = ((y - mean) ** 2).mean(axis=(0, 2, 3), keepdims=True)  # biased (training BN)
    y = (y - mean) / jnp.sqrt(var + eps)
    y = y * gamma.reshape(1, -1, 1, 1) + beta.reshape(1, -1, 1, 1)
    if if_act:
        y = jnp.clip(y, 0.0, 6.0)
    return y


if __name__ == "__main__":
    # ConvBNLayer(num_channels=4, filter_size=3, num_filters=8, stride=1, padding=1)
    N, C, H, W = 2, 4, 16, 16
    F, K, stride, padding = 8, 3, 1, 1

    key = jax.random.PRNGKey(0)
    kx, kw, kg, kb = jax.random.split(key, 4)
    x = jax.random.normal(kx, (N, C, H, W), jnp.float32)
    weight = jax.random.normal(kw, (F, C, K, K), jnp.float32) * 0.1   # Conv2d weight, no bias
    gamma = 1.0 + 0.1 * jax.random.normal(kg, (F,), jnp.float32)      # BN weight
    beta = 0.1 * jax.random.normal(kb, (F,), jnp.float32)             # BN bias

    ref = _reference(x, weight, gamma, beta,
                     stride=stride, padding=padding, if_act=True)

    # f32 compute path: tight numeric check against the f32 reference.
    out_f32 = conv_bn_layer(x, weight, gamma, beta, stride=stride, padding=padding,
                            if_act=True, compute_dtype=jnp.float32)
    out_f32 = jax.block_until_ready(out_f32)
    assert out_f32.shape == (N, F, H, W)
    assert jnp.allclose(out_f32, ref, atol=2e-3, rtol=2e-3), "f32 path mismatch"

    # Default bf16-MXU path: looser tolerance (bf16 inputs / bf16 intermediate,
    # stats and accumulation stay f32).
    out_bf16 = conv_bn_layer(x, weight, gamma, beta, stride=stride, padding=padding,
                             if_act=True)
    out_bf16 = jax.block_until_ready(out_bf16)
    assert out_bf16.shape == (N, F, H, W)
    assert jnp.allclose(out_bf16, ref, atol=5e-2, rtol=5e-2), "bf16 path mismatch"

    print("KERNEL_OK")
</pallas_src>

<mosaic_0001>
module attributes {stable_mosaic.version = 11 : i64} {
  func.func @_conv_stats_kernel(%arg0: i32, %arg1: i32, %arg2: memref<1x4x18x18xf32, #tpu.memory_space<vmem>>, %arg3: memref<8x40xf32, #tpu.memory_space<vmem>>, %arg4: memref<1x8x128xf32, #tpu.memory_space<vmem>>, %arg5: memref<1x1x8x2xf32, #tpu.memory_space<vmem>>) attributes {dimension_semantics = [#tpu.dimension_semantics<parallel>, #tpu.dimension_semantics<parallel>], iteration_bounds = array<i64: 2, 2>, scalar_prefetch = 0 : i64, scratch_operands = 0 : i64, tpu.core_type = #tpu.core_type<tc>, window_params = [{transform_indices = @transform_0, window_bounds = array<i64: 1, 4, 18, 18>}, {pipeline_mode = #tpu.pipeline_mode<synchronous>, transform_indices = @transform_1, window_bounds = array<i64: 8, 40>}, {transform_indices = @transform_2, window_bounds = array<i64: 1, 8, 128>}, {transform_indices = @transform_3, window_bounds = array<i64: 1, 1, 8, 2>}]} {
    %c8_i32 = arith.constant 8 : i32
    %0 = arith.muli %arg1, %c8_i32 : i32
    %1 = tpu.assume_multiple %0, 8 : i32
    %c0 = arith.constant 0 : index
    %c0_0 = arith.constant 0 : index
    %2 = arith.index_cast %1 : i32 to index
    %c0_1 = arith.constant 0 : index
    %3 = vector.load %arg2[%c0, %c0_0, %2, %c0_1] : memref<1x4x18x18xf32, #tpu.memory_space<vmem>>, vector<1x4x10x18xf32>
    %4 = vector.shape_cast %3 : vector<1x4x10x18xf32> to vector<4x10x18xf32>
    %5 = vector.extract_strided_slice %4 {offsets = [0, 0, 0], sizes = [4, 8, 16], strides = [1, 1, 1]} : vector<4x10x18xf32> to vector<4x8x16xf32>
    %6 = vector.extract_strided_slice %4 {offsets = [0, 0, 1], sizes = [4, 8, 16], strides = [1, 1, 1]} : vector<4x10x18xf32> to vector<4x8x16xf32>
    %7 = vector.extract_strided_slice %4 {offsets = [0, 0, 2], sizes = [4, 8, 16], strides = [1, 1, 1]} : vector<4x10x18xf32> to vector<4x8x16xf32>
    %8 = vector.extract_strided_slice %4 {offsets = [0, 1, 0], sizes = [4, 8, 16], strides = [1, 1, 1]} : vector<4x10x18xf32> to vector<4x8x16xf32>
    %9 = vector.extract_strided_slice %4 {offsets = [0, 1, 1], sizes = [4, 8, 16], strides = [1, 1, 1]} : vector<4x10x18xf32> to vector<4x8x16xf32>
    %10 = vector.extract_strided_slice %4 {offsets = [0, 1, 2], sizes = [4, 8, 16], strides = [1, 1, 1]} : vector<4x10x18xf32> to vector<4x8x16xf32>
    %11 = vector.extract_strided_slice %4 {offsets = [0, 2, 0], sizes = [4, 8, 16], strides = [1, 1, 1]} : vector<4x10x18xf32> to vector<4x8x16xf32>
    %12 = vector.extract_strided_slice %4 {offsets = [0, 2, 1], sizes = [4, 8, 16], strides = [1, 1, 1]} : vector<4x10x18xf32> to vector<4x8x16xf32>
    %13 = vector.extract_strided_slice %4 {offsets = [0, 2, 2], sizes = [4, 8, 16], strides = [1, 1, 1]} : vector<4x10x18xf32> to vector<4x8x16xf32>
    %cst = arith.constant 0.000000e+00 : f32
    %14 = vector.broadcast %cst : f32 to vector<4x8x16xf32>
    %15 = tpu.concatenate %5, %6, %7, %8, %9, %10, %11, %12, %13, %14 in 0 : vector<4x8x16xf32>, vector<4x8x16xf32>, vector<4x8x16xf32>, vector<4x8x16xf32>, vector<4x8x16xf32>, vector<4x8x16xf32>, vector<4x8x16xf32>, vector<4x8x16xf32>, vector<4x8x16xf32>, vector<4x8x16xf32> -> vector<40x8x16xf32>
    %16 = vector.extract_strided_slice %15 {offsets = [0, 0, 0], sizes = [40, 1, 16], strides = [1, 1, 1]} : vector<40x8x16xf32> to vector<40x1x16xf32>
    %17 = vector.shape_cast %16 : vector<40x1x16xf32> to vector<40x16xf32>
    %18 = vector.extract_strided_slice %15 {offsets = [0, 1, 0], sizes = [40, 1, 16], strides = [1, 1, 1]} : vector<40x8x16xf32> to vector<40x1x16xf32>
    %19 = vector.shape_cast %18 : vector<40x1x16xf32> to vector<40x16xf32>
    %20 = vector.extract_strided_slice %15 {offsets = [0, 2, 0], sizes = [40, 1, 16], strides = [1, 1, 1]} : vector<40x8x16xf32> to vector<40x1x16xf32>
    %21 = vector.shape_cast %20 : vector<40x1x16xf32> to vector<40x16xf32>
    %22 = vector.extract_strided_slice %15 {offsets = [0, 3, 0], sizes = [40, 1, 16], strides = [1, 1, 1]} : vector<40x8x16xf32> to vector<40x1x16xf32>
    %23 = vector.shape_cast %22 : vector<40x1x16xf32> to vector<40x16xf32>
    %24 = vector.extract_strided_slice %15 {offsets = [0, 4, 0], sizes = [40, 1, 16], strides = [1, 1, 1]} : vector<40x8x16xf32> to vector<40x1x16xf32>
    %25 = vector.shape_cast %24 : vector<40x1x16xf32> to vector<40x16xf32>
    %26 = vector.extract_strided_slice %15 {offsets = [0, 5, 0], sizes = [40, 1, 16], strides = [1, 1, 1]} : vector<40x8x16xf32> to vector<40x1x16xf32>
    %27 = vector.shape_cast %26 : vector<40x1x16xf32> to vector<40x16xf32>
    %28 = vector.extract_strided_slice %15 {offsets = [0, 6, 0], sizes = [40, 1, 16], strides = [1, 1, 1]} : vector<40x8x16xf32> to vector<40x1x16xf32>
    %29 = vector.shape_cast %28 : vector<40x1x16xf32> to vector<40x16xf32>
    %30 = vector.extract_strided_slice %15 {offsets = [0, 7, 0], sizes = [40, 1, 16], strides = [1, 1, 1]} : vector<40x8x16xf32> to vector<40x1x16xf32>
    %31 = vector.shape_cast %30 : vector<40x1x16xf32> to vector<40x16xf32>
    %32 = tpu.concatenate %17, %19, %21, %23, %25, %27, %29, %31 in 1 : vector<40x16xf32>, vector<40x16xf32>, vector<40x16xf32>, vector<40x16xf32>, vector<40x16xf32>, vector<40x16xf32>, vector<40x16xf32>, vector<40x16xf32> -> vector<40x128xf32>
    %c0_2 = arith.constant 0 : index
    %c0_3 = arith.constant 0 : index
    %33 = vector.load %arg3[%c0_2, %c0_3] : memref<8x40xf32, #tpu.memory_space<vmem>>, vector<8x40xf32>
    %cst_4 = arith.constant dense<0.000000e+00> : vector<8x128xf32>
    %34 = tpu.matmul %33, %32, %cst_4 {dimension_numbers = #tpu.dot_dimension_numbers<[1], [0], [0], [1], [0, 0, 1, 1], [], []>} : vector<8x40xf32>, vector<40x128xf32>, vector<8x128xf32> -> vector<8x128xf32>
    %c0_5 = arith.constant 0 : index
    %c0_6 = arith.constant 0 : index
    %c0_7 = arith.constant 0 : index
    %35 = vector.load %arg4[%c0_5, %c0_6, %c0_7] : memref<1x8x128xf32, #tpu.memory_space<vmem>>, vector<1x8x128xf32>
    %36 = vector.shape_cast %35 : vector<1x8x128xf32> to vector<8x128xf32>
    %37 = vector.shape_cast %34 : vector<8x128xf32> to vector<1x8x128xf32>
    tpu.vector_store %arg4[%c0_5, %c0_6, %c0_7], %37 {strides = array<i32>} : memref<1x8x128xf32, #tpu.memory_space<vmem>>, vector<1x8x128xf32>,
    %cst_8 = arith.constant dense<0.000000e+00> : vector<8xf32>
    %38 = vector.multi_reduction <add>, %34, %cst_8 [1] : vector<8x128xf32> to vector<8xf32>
    %39 = vector.shape_cast %38 : vector<8xf32> to vector<8x1xf32>
    %40 = arith.mulf %34, %34 : vector<8x128xf32>
    %cst_9 = arith.constant dense<0.000000e+00> : vector<8xf32>
    %41 = vector.multi_reduction <add>, %40, %cst_9 [1] : vector<8x128xf32> to vector<8xf32>
    %42 = vector.shape_cast %41 : vector<8xf32> to vector<8x1xf32>
    %43 = tpu.concatenate %39, %42 in 1 : vector<8x1xf32>, vector<8x1xf32> -> vector<8x2xf32>
    %c0_10 = arith.constant 0 : index
    %c0_11 = arith.constant 0 : index
    %c0_12 = arith.constant 0 : index
    %c0_13 = arith.constant 0 : index
    %44 = vector.load %arg5[%c0_10, %c0_11, %c0_12, %c0_13] : memref<1x1x8x2xf32, #tpu.memory_space<vmem>>, vector<1x1x8x2xf32>
    %45 = vector.shape_cast %44 : vector<1x1x8x2xf32> to vector<8x2xf32>
    %46 = vector.shape_cast %43 : vector<8x2xf32> to vector<1x1x8x2xf32>
    tpu.vector_store %arg5[%c0_10, %c0_11, %c0_12, %c0_13], %46 {strides = array<i32>} : memref<1x1x8x2xf32, #tpu.memory_space<vmem>>, vector<1x1x8x2xf32>,
    return
  }
  func.func @transform_0(%arg0: i32, %arg1: i32) -> (i32, i32, i32, i32) {
    %c0_i32 = arith.constant 0 : i32
    %c0_i32_0 = arith.constant 0 : i32
    %c0_i32_1 = arith.constant 0 : i32
    %c0_i32_2 = arith.constant 0 : i32
    return %arg0, %c0_i32, %c0_i32_0, %c0_i32_1 : i32, i32, i32, i32
  }
  func.func @transform_1(%arg0: i32, %arg1: i32) -> (i32, i32) {
    %c0_i32 = arith.constant 0 : i32
    %c0_i32_0 = arith.constant 0 : i32
    %c0_i32_1 = arith.constant 0 : i32
    return %c0_i32, %c0_i32_0 : i32, i32
  }
  func.func @transform_2(%arg0: i32, %arg1: i32) -> (i32, i32, i32) {
    %c0_i32 = arith.constant 0 : i32
    %c0_i32_0 = arith.constant 0 : i32
    return %arg0, %c0_i32, %arg1 : i32, i32, i32
  }
  func.func @transform_3(%arg0: i32, %arg1: i32) -> (i32, i32, i32, i32) {
    %c0_i32 = arith.constant 0 : i32
    %c0_i32_0 = arith.constant 0 : i32
    %c0_i32_1 = arith.constant 0 : i32
    return %arg0, %arg1, %c0_i32, %c0_i32_0 : i32, i32, i32, i32
  }
}

module attributes {stable_mosaic.version = 11 : i64} {
  func.func @_bn_act_kernel(%arg0: i32, %arg1: i32, %arg2: memref<1x8x256xf32, #tpu.memory_space<vmem>>, %arg3: memref<8x1xf32, #tpu.memory_space<vmem>>, %arg4: memref<8x1xf32, #tpu.memory_space<vmem>>, %arg5: memref<1x8x256xf32, #tpu.memory_space<vmem>>) attributes {dimension_semantics = [#tpu.dimension_semantics<parallel>, #tpu.dimension_semantics<parallel>], iteration_bounds = array<i64: 2, 1>, scalar_prefetch = 0 : i64, scratch_operands = 0 : i64, tpu.core_type = #tpu.core_type<tc>, window_params = [{transform_indices = @transform_0, window_bounds = array<i64: 1, 8, 256>}, {pipeline_mode = #tpu.pipeline_mode<synchronous>, transform_indices = @transform_1, window_bounds = array<i64: 8, 1>}, {pipeline_mode = #tpu.pipeline_mode<synchronous>, transform_indices = @transform_2, window_bounds = array<i64: 8, 1>}, {transform_indices = @transform_3, window_bounds = array<i64: 1, 8, 256>}]} {
    %c0 = arith.constant 0 : index
    %c0_0 = arith.constant 0 : index
    %c0_1 = arith.constant 0 : index
    %0 = vector.load %arg2[%c0, %c0_0, %c0_1] : memref<1x8x256xf32, #tpu.memory_space<vmem>>, vector<1x8x256xf32>
    %1 = vector.shape_cast %0 : vector<1x8x256xf32> to vector<8x256xf32>
    %c0_2 = arith.constant 0 : index
    %c0_3 = arith.constant 0 : index
    %2 = vector.load %arg3[%c0_2, %c0_3] : memref<8x1xf32, #tpu.memory_space<vmem>>, vector<8x1xf32>
    %3 = vector.broadcast %2 : vector<8x1xf32> to vector<8x256xf32>
    %4 = arith.mulf %1, %3 : vector<8x256xf32>
    %c0_4 = arith.constant 0 : index
    %c0_5 = arith.constant 0 : index
    %5 = vector.load %arg4[%c0_4, %c0_5] : memref<8x1xf32, #tpu.memory_space<vmem>>, vector<8x1xf32>
    %6 = vector.broadcast %5 : vector<8x1xf32> to vector<8x256xf32>
    %7 = arith.addf %4, %6 : vector<8x256xf32>
    %cst = arith.constant 0.000000e+00 : f32
    %cst_6 = arith.constant 6.000000e+00 : f32
    %8 = vector.broadcast %cst : f32 to vector<8x256xf32>
    %9 = arith.maximumf %8, %7 : vector<8x256xf32>
    %10 = vector.broadcast %cst_6 : f32 to vector<8x256xf32>
    %11 = arith.minimumf %10, %9 : vector<8x256xf32>
    %c0_7 = arith.constant 0 : index
    %c0_8 = arith.constant 0 : index
    %c0_9 = arith.constant 0 : index
    %12 = vector.load %arg5[%c0_7, %c0_8, %c0_9] : memref<1x8x256xf32, #tpu.memory_space<vmem>>, vector<1x8x256xf32>
    %13 = vector.shape_cast %12 : vector<1x8x256xf32> to vector<8x256xf32>
    %14 = vector.shape_cast %11 : vector<8x256xf32> to vector<1x8x256xf32>
    tpu.vector_store %arg5[%c0_7, %c0_8, %c0_9], %14 {strides = array<i32>} : memref<1x8x256xf32, #tpu.memory_space<vmem>>, vector<1x8x256xf32>,
    return
  }
  func.func @transform_0(%arg0: i32, %arg1: i32) -> (i32, i32, i32) {
    %c0_i32 = arith.constant 0 : i32
    %c0_i32_0 = arith.constant 0 : i32
    return %arg0, %c0_i32, %arg1 : i32, i32, i32
  }
  func.func @transform_1(%arg0: i32, %arg1: i32) -> (i32, i32) {
    %c0_i32 = arith.constant 0 : i32
    %c0_i32_0 = arith.constant 0 : i32
    %c0_i32_1 = arith.constant 0 : i32
    return %c0_i32, %c0_i32_0 : i32, i32
  }
  func.func @transform_2(%arg0: i32, %arg1: i32) -> (i32, i32) {
    %c0_i32 = arith.constant 0 : i32
    %c0_i32_0 = arith.constant 0 : i32
    %c0_i32_1 = arith.constant 0 : i32
    return %c0_i32, %c0_i32_0 : i32, i32
  }
  func.func @transform_3(%arg0: i32, %arg1: i32) -> (i32, i32, i32) {
    %c0_i32 = arith.constant 0 : i32
    %c0_i32_0 = arith.constant 0 : i32
    return %arg0, %c0_i32, %arg1 : i32, i32, i32
  }
}

</mosaic_0001>

<bundles_post_ra>
// kernel: conv_bn_layer.3
= control target key start
LH: loop header
LB: loop body
LE: loop exit
PB: predicated region body
PF: predicated region fallthrough
CT: control target
= control target key end

     0   :  { %s405_s12 = smov 0   ;;  %s407_s13 = smov 0   ;;  %s444_s0 = inlined_call_operand.vmem [shape: f32[2,8,256], index: 0, kind: input, shape index: {}]   ;;  %s445_s1 = inlined_call_operand.vmem [shape: f32[8,1], index: 1, kind: input, shape index: {}]   ;;  %s446_s2 = inlined_call_operand.vmem [shape: f32[8,1], index: 2, kind: input, shape index: {}]   ;;  %s447_s3 = inlined_call_operand.vmem [shape: f32[2,8,256], index: 3, kind: output, shape index: {}]  }
   0x1   :  { %s409_s14 = smov 0  }
   0x2 LB: > { %s25_s15 = sadd.s32 1, %s378_s13  ;;  %p325_p0 = scmp.ge.s32.totalorder %s382_s14, 1  ;;  %s382_s14 = sphi %s409_s14, %s13_s14   ;;  %s378_s13 = sphi %s407_s13, %s449_s13   ;;  %s374_s12 = sphi %s405_s12, %s448_s12  }
   0x3   : > { %p27_p1 = scmp.ge.s32.totalorder %s25_s15, 2  ;;  %p158_p2 = scmp.lt.s32.totalorder %s382_s14, 3 }
   0x5   : > { %s451_s15 = smov (%p27_p1, %s25_s15), 0  ;;  %p159_p3 = pnand %p325_p0, %p158_p2 }
   0x6   : > { %v212_v0 = vld [vmem:[%s445_s1] sm:$0xff] (!%p159_p3)  ;;  %v384_v1 = vmov (!%p159_p3), 0   ;;  %p191_p4 = scmp.lt.s32.totalorder (!%p159_p3), %s374_s12, 1 }
   0x7   : > { %162 = sbr.rel (%p159_p3) target bundleno = 147 (0x93), region = 32  ;;  %359 = vset.pattern.permute.xlu0 (!%p159_p3), %v384_v1  ;;  %v220_v2 = vld [vmem:[%s446_s2] sm:$0xff] (!%p159_p3) }
   0x8   : > { %215 = vperm.xlu0 (!%p159_p3), %359, %v212_v0  }
   0xc   : > { %223 = vperm.xlu0 (!%p159_p3), %359, %v220_v2  }
   0xe   : > { %s453_s12 = smov (!%p191_p4, %s374_s12), 1 }
   0xf   : > { %s332_s20 = sshll.u32 %s453_s12, 4 }
  0x10   : > { %s198_s23 = scalar_lea.vmem %s444_s0, %s332_s20  ;;  %s208_s26 = scalar_lea.vmem %s447_s3, %s332_s20 }
  0x11   : > { %v210_v4 = vld [vmem:[%s198_s23] sm:$0xff]  ;;  %v211_v5 = vld [vmem:[%s198_s23 + $0x8] sm:$0xff] }
  0x87   : > { %v216_v3 = vpop.permute.xlu0 %215 }
  0x88   : > { %v218_v6 = vmul.f32 %v216_v3, %v210_v4  ;;  %v219_v7 = vmul.f32 %v216_v3, %v211_v5 }
  0x8b   : > { %v224_v8 = vpop.permute.xlu0 %223 }
  0x8c   : > { %v226_v9 = vadd.f32 %v224_v8, %v218_v6  ;;  %v227_v10 = vadd.f32 %v224_v8, %v219_v7 }
  0x8e   : > { %v228_v11 = vmax.f32 %v226_v9, 0.0  ;;  %v229_v12 = vmax.f32 %v227_v10, 0.0 }
  0x90   : > { %v230_v13 = vmin.f32 %v228_v11, 6.0  ;;  %v231_v14 = vmin.f32 %v229_v12, 6.0 }
  0x92   : > { %232 = vst [vmem:[%s208_s26] sm:$0xff] %v230_v13  ;;  %233 = vst [vmem:[%s208_s26 + $0x8] sm:$0xff] %v231_v14 }
  0x93 PF: > { %s13_s14 = sadd.s32 1, %s382_s14   ;;  %s448_s12 = smov %s378_s13 }
  0x94   : > { %p10_p5 = scmp.ge.s32.totalorder %s13_s14, 4   ;;  %s449_s13 = smov %s451_s15 }
  0x96   :  { %12 = sbr.rel (!%p10_p5) target bundleno = 2 (0x2), region = 62 }

// kernel: conv_bn_layer.2
= control target key start
LH: loop header
LB: loop body
LE: loop exit
PB: predicated region body
PF: predicated region fallthrough
CT: control target
= control target key end

     0   :  { %s1493_s12 = smov 0   ;;  %s1495_s13 = smov 0   ;;  %s2448_s0 = inlined_call_operand.vmem [shape: f32[2,4,18,18], index: 0, kind: input, shape index: {}]   ;;  %s2449_s1 = inlined_call_operand.vmem [shape: f32[8,40], index: 1, kind: input, shape index: {}]   ;;  %s2450_s2 = inlined_call_operand.vmem [shape: f32[2,8,256], index: 2, kind: output, shape index: {0}]   ;;  %s2451_s3 = inlined_call_operand.vmem [shape: f32[2,2,8,2], index: 3, kind: output, shape index: {1}]  }
   0x1   :  { %s1497_s14 = smov 0   ;;  %s1499_s15 = smov 0  }
   0x2   :  { %s1501_s16 = smov 0  }
   0x3 LB: > { %s23_s17 = sadd.s32 1, %s1451_s14  ;;  %s26_s18 = sadd.s32 1, %s1455_s15  ;;  %s1459_s16 = sphi %s1501_s16, %s14_s16   ;;  %s1455_s15 = sphi %s1499_s15, %s2482_s15   ;;  %s1451_s14 = sphi %s1497_s14, %s2481_s14   ;;  %s1447_s13 = sphi %s1495_s13, %s2480_s13   ;;  %s1443_s12 = sphi %s1493_s12, %s2479_s12  }
   0x4   : > { %p24_p0 = scmp.ge.s32.totalorder %s23_s17, 2  ;;  %p1213_p1 = scmp.ge.s32.totalorder %s1459_s16, 1 }
   0x5   : > { %p156_p2 = scmp.lt.s32.totalorder %s1459_s16, 5 }
   0x6   : > { %s2484_s17 = smov (%p24_p0, %s23_s17), 0  ;;  %s2486_s18 = smov (!%p24_p0, %s26_s18), %s1455_s15 }
   0x7   : > { %p157_p3 = pnand %p1213_p1, %p156_p2  ;;  %p28_p4 = scmp.ge.s32.totalorder %s2486_s18, 2 }
   0x9   : > { %s2488_s18 = smov (%p28_p4, %s2486_s18), 0  ;;  %160 = sbr.rel (%p157_p3) target bundleno = 723 (0x2d3), region = 28 }
  0x10   : > { %p191_p5 = scmp.lt.s32.totalorder %s1447_s13, 1  ;;  %s1219_s20 = sshll.u32 %s1443_s12, 3  ;;  %vm246_vm0 = vcmask 1046528   ;;  %vm275_vm1 = vcmask 1045504   ;;  %vm306_vm2 = vcmask 1041409   ;;  %vm309_vm3 = vcmask 1042434  }
  0x11   : > { %s1461_s25 = smov 127   ;;  %s1462_s26 = smov 126   ;;  %vm312_vm4 = vcmask 1043459   ;;  %vm315_vm5 = vcmask 1044484   ;;  %vm318_vm6 = vcmask 1045509   ;;  %vm321_vm7 = vcmask 1046534  }
  0x12   : > { %s2490_s13 = smov (!%p191_p5, %s1447_s13), 1  ;;  %vm324_vm8 = vcmask 1047559   ;;  %s1464_s27 = smov 32   ;;  %vm1472_vm9 = vmmov 0   ;;  %vm953_vm10 = vcmask 130048   ;;  %vm959_vm11 = vcmask 261120  }
  0x13   : > { %s1248_s19 = smul.u32 96, %s2490_s13  ;;  %s1465_s28 = smov 16   ;;  %vm965_vm12 = vcmask 392192   ;;  %vm971_vm13 = vcmask 523264   ;;  %vm977_vm14 = vcmask 654336   ;;  %vm983_vm15 = vcmask 785408  }
  0x14   : > { %s1466_s29 = smov 64   ;;  %s1467_s30 = smov 48  }
  0x15   : > { %s195_s23 = scalar_lea.vmem %s2448_s0, %s1248_s19  ;;  %s1468_s4 = smov 80  }
  0x16   : > { %s213_s24 = scalar_lea.vmem %s195_s23, %s1219_s20  ;;  %s1469_s5 = smov 96  }
  0x17   : > { %v1532_v0 = vld [vmem:[%s213_s24] sm:$0xff]  ;;  %v1534_v1 = vld [vmem:[%s213_s24 + $0x18] sm:$0xff]  ;;  %v1536_v2 = vld [vmem:[%s213_s24 + $0x30] sm:$0xff]  ;;  %s1470_s6 = smov 112   ;;  %p198_p6 = scmp.lt.s32.totalorder %s1443_s12, 1 }
  0x18   : > { %v1311_v3 = vpack.i.bf16 %v1534_v1, %v1532_v0  ;;  %v1540_v4 = vld [vmem:[%s213_s24 + $0x48] sm:$0xff]  ;;  %v247_v6 = vrot.slane %v1532_v0, 1  ;;  %v217_v7 = vld [vmem:[%s213_s24 + $0x20] sm:$0x3]  ;;  %v219_v10 = vld [vmem:[%s213_s24 + $0x38] sm:$0x3] }
  0x19   : > { %v215_v5 = vld [vmem:[%s213_s24 + $0x8] sm:$0x3]  ;;  %v1306_v8 = vpack.i.bf16 %v1540_v4, %v1536_v2  ;;  %v250_v11 = vrot.slane %v1534_v1, 1  ;;  %v251_v12 = vrot.slane %v217_v7, 1  ;;  %v253_v13 = vrot.slane %v1536_v2, 1  ;;  %s2492_s12 = smov (!%p198_p6, %s1443_s12), 1 }
  0x1a   : > { %v248_v9 = vrot.slane %v215_v5, 1  ;;  %1312 = vrot.lane.b32.xlu1 %v1311_v3, %s1461_s25  ;;  %1302 = vrot.lane.b32.xlu0 %v1311_v3, %s1462_s26  ;;  %v254_v14 = vrot.slane %v219_v10, 1  ;;  %v221_v15 = vld [vmem:[%s213_s24 + $0x50] sm:$0x3]  ;;  %v256_v16 = vrot.slane %v1540_v4, 1  ;;  %v276_v17 = vrot.slane %v1532_v0, 2 }
  0x1b   : > { %v1555_v19 = vsel %vm246_vm0, %v250_v11, %v251_v12  ;;  %v257_v20 = vrot.slane %v221_v15, 1  ;;  %v277_v21 = vrot.slane %v215_v5, 2  ;;  %v279_v24 = vrot.slane %v1534_v1, 2  ;;  %s1215_s9 = sshll.u32 %s2490_s13, 1 }
  0x1c   : > { %v1552_v18 = vsel %vm246_vm0, %v247_v6, %v248_v9  ;;  %v1560_v23 = vsel %vm246_vm0, %v253_v13, %v254_v14  ;;  %v280_v27 = vrot.slane %v217_v7, 2  ;;  %v282_v30 = vrot.slane %v1536_v2, 2  ;;  %s201_s10 = sadd.s32 %s1215_s9, %s2492_s12 }
  0x1d   : > { %v1316_v22 = vpack.i.bf16 %v1536_v2, %v1552_v18  ;;  %v1321_v25 = vpack.i.bf16 %v1560_v23, %v1555_v19  ;;  %v1566_v26 = vsel %vm246_vm0, %v256_v16, %v257_v20  ;;  %v1573_v29 = vsel %vm275_vm1, %v276_v17, %v277_v21  ;;  %s1216_s11 = sshll.u32 %s201_s10, 3 }
  0x1e   : > { %1307 = vrot.lane.b32.xlu0 %v1306_v8, %s1462_s26  ;;  %v1326_v28 = vpack.i.bf16 %v1566_v26, %v1540_v4  ;;  %2456 = vst [vmem:[#allocation2_spill] sm:$0xff] %v1573_v29  ;;  %v283_v31 = vrot.slane %v219_v10, 2  ;;  %v1577_v32 = vsel %vm275_vm1, %v279_v24, %v280_v27  ;;  %v285_v33 = vrot.slane %v1540_v4, 2  ;;  %s203_s21 = scalar_lea.vmem %s2450_s2, %s1216_s11  ;;  %s211_s24 = scalar_lea.vmem %s2451_s3, %s1216_s11 }
  0x1f   : > { %1317 = vrot.lane.b32.xlu1 %v1316_v22, %s1461_s25  ;;  %v286_v34 = vrot.slane %v221_v15, 2  ;;  %v468_v35 = vsel %vm306_vm2, %v250_v11, %v276_v17  ;;  %v470_v37 = vrot.slane %v1540_v4, 7  ;;  %v1331_v38 = vpack.i.bf16 %v1555_v19, %v1552_v18 }
  0x20   : > { %v469_v36 = vsel %vm309_vm3, %v1536_v2, %v468_v35  ;;  %v1336_v39 = vpack.i.bf16 %v1577_v32, %v1573_v29  ;;  %v387_v41 = vsel %vm306_vm2, %v1534_v1, %v247_v6  ;;  %v1596_v42 = vsel %vm275_vm1, %v282_v30, %v283_v31 }
  0x21   : > { %v1591_v40 = vsel %vm312_vm4, %v470_v37, %v469_v36  ;;  %v1599_v43 = vsel %vm275_vm1, %v285_v33, %v286_v34  ;;  %v388_v44 = vrot.slane %v1536_v2, 7  ;;  %v390_v45 = vrot.slane %v1540_v4, 6 }
  0x22   : > { %1322 = vrot.lane.b32.xlu0 %v1321_v25, %s1461_s25  ;;  %2457 = vst [vmem:[#allocation3_spill] sm:$0xff] %v1599_v43  ;;  %v628_v46 = vrot.slane %v1532_v0, 4  ;;  %v629_v47 = vrot.slane %v1534_v1, 3  ;;  %v1341_v48 = vpack.i.bf16 %v1566_v26, %v1560_v23  ;;  %v1346_v50 = vpack.i.bf16 %v1599_v43, %v1596_v42 }
  0x23   : > { %1327 = vrot.lane.b32.xlu1 %v1326_v28, %s1461_s25  ;;  %v389_v49 = vsel %vm309_vm3, %v388_v44, %v387_v41  ;;  %v548_v53 = vrot.slane %v1532_v0, 3  ;;  %v708_v55 = vrot.slane %v1532_v0, 5  ;;  %v709_v56 = vrot.slane %v1534_v1, 4 }
  0x24   : > { %v1613_v51 = vsel %vm312_vm4, %v390_v45, %v389_v49  ;;  %v630_v52 = vsel %vm306_vm2, %v629_v47, %v628_v46  ;;  %v711_v59 = vrot.slane %v1536_v2, 3  ;;  %v789_v62 = vrot.slane %v1532_v0, 6 }
  0x25   : > { %v631_v54 = vsel %vm309_vm3, %v282_v30, %v630_v52  ;;  %v549_v58 = vsel %vm306_vm2, %v279_v24, %v548_v53  ;;  %v710_v61 = vsel %vm306_vm2, %v709_v56, %v708_v55  ;;  %v790_v5 = vrot.slane %v1534_v1, 5 }
  0x26   : > { %1332 = vrot.lane.b32.xlu0 %v1331_v38, %s1462_s26  ;;  %v1621_v57 = vsel %vm312_vm4, %v256_v16, %v631_v54  ;;  %v550_v60 = vsel %vm309_vm3, %v253_v13, %v549_v58  ;;  %v712_v3 = vsel %vm309_vm3, %v711_v59, %v710_v61  ;;  %v792_v6 = vrot.slane %v1536_v2, 4 }
  0x27   : > { %1337 = vrot.lane.b32.xlu1 %v1336_v39, %s1461_s25  ;;  %v1632_v63 = vsel %vm312_vm4, %v1540_v4, %v550_v60  ;;  %v1638_v7 = vsel %vm312_vm4, %v285_v33, %v712_v3  ;;  %v794_v8 = vrot.slane %v1540_v4, 3  ;;  %v791_v9 = vsel %vm306_vm2, %v790_v5, %v789_v62 }
  0x28   : > { %v793_v10 = vsel %vm309_vm3, %v792_v6, %v791_v9  ;;  %v871_v12 = vrot.slane %v1532_v0, 7  ;;  %v872_v13 = vrot.slane %v1534_v1, 6  ;;  %v874_v14 = vrot.slane %v1536_v2, 5 }
  0x29   : > { %v1648_v11 = vsel %vm312_vm4, %v794_v8, %v793_v10  ;;  %v876_v16 = vrot.slane %v1540_v4, 4  ;;  %v305_v21 = vrot.slane %v1534_v1, 7  ;;  %v308_v22 = vrot.slane %v1536_v2, 6 }
  0x2a   : > { %1342 = vrot.lane.b32.xlu0 %v1341_v48, %s1462_s26  ;;  %v873_v15 = vsel %vm306_vm2, %v872_v13, %v871_v12  ;;  %v311_v25 = vrot.slane %v1540_v4, 5  ;;  %v428_v30 = vrot.slane %v1573_v29, 1  ;;  %v430_v31 = vrot.slane %v1596_v42, 7 }
  0x2b   : > { %1347 = vrot.lane.b32.xlu1 %v1346_v50, %s1461_s25  ;;  %v875_v17 = vsel %vm309_vm3, %v874_v14, %v873_v15  ;;  %v307_v24 = vsel %vm306_vm2, %v305_v21, %v1532_v0  ;;  %v486_v33 = vrot.slane %v1552_v18, 6  ;;  %v488_v1 = vrot.slane %v1555_v19, 5 }
  0x2c   : > { %v1661_v20 = vsel %vm312_vm4, %v876_v16, %v875_v17  ;;  %v310_v27 = vsel %vm309_vm3, %v308_v22, %v307_v24  ;;  %v429_v2 = vsel %vm306_vm2, %v1577_v32, %v428_v30  ;;  %v490_v0 = vrot.slane %v1560_v23, 4 }
  0x2d   : > { %v1670_v28 = vsel %vm312_vm4, %v311_v25, %v310_v27  ;;  %v492_v4 = vrot.slane %v1566_v26, 3  ;;  %v406_v34 = vrot.slane %v1552_v18, 5  ;;  %v408_v35 = vrot.slane %v1555_v19, 4 }
  0x2e   : > { %296 = vrot.lane.b32.xlu0 %v1573_v29, %s1462_s26  ;;  %v431_v45 = vsel %vm309_vm3, %v430_v31, %v429_v2  ;;  %v432_v46 = vrot.slane %v1599_v43, 6  ;;  %v508_v47 = vrot.slane %v1573_v29, 2  ;;  %v509_v48 = vrot.slane %v1577_v32, 1 }
  0x2f   : > { %298 = vrot.lane.b32.xlu1 %v1577_v32, %s1462_s26  ;;  %v588_v49 = vrot.slane %v1573_v29, 3  ;;  %v589_v50 = vrot.slane %v1577_v32, 2  ;;  %v749_v56 = vrot.slane %v1573_v29, 5  ;;  %v750_v58 = vrot.slane %v1577_v32, 4 }
  0x30   : > { %v668_v59 = vrot.slane %v1573_v29, 4  ;;  %v669_v60 = vrot.slane %v1577_v32, 3  ;;  %v1705_v3 = vsel %vm312_vm4, %v432_v46, %v431_v45  ;;  %v591_v5 = vrot.slane %v1596_v42, 1 }
  0x31   : > { %v510_v6 = vsel %vm306_vm2, %v509_v48, %v508_v47  ;;  %v590_v8 = vsel %vm306_vm2, %v589_v50, %v588_v49  ;;  %v752_v9 = vrot.slane %v1596_v42, 3  ;;  %v671_v10 = vrot.slane %v1596_v42, 2 }
  0x32   : > { %300 = vrot.lane.b32.xlu0 %v1596_v42, %s1462_s26  ;;  %v831_v12 = vrot.slane %v1573_v29, 6  ;;  %v832_v13 = vrot.slane %v1577_v32, 5  ;;  %v913_v14 = vrot.slane %v1573_v29, 7  ;;  %v914_v15 = vrot.slane %v1577_v32, 6 }
  0x33   : > { %302 = vrot.lane.b32.xlu1 %v1599_v43, %s1462_s26  ;;  %v512_v17 = vrot.slane %v1599_v43, 7  ;;  %v751_v21 = vsel %vm306_vm2, %v750_v58, %v749_v56  ;;  %v670_v22 = vsel %vm306_vm2, %v669_v60, %v668_v59  ;;  %v511_v27 = vsel %vm309_vm3, %v1596_v42, %v510_v6 }
  0x34   : > { %v592_v30 = vsel %vm309_vm3, %v591_v5, %v590_v8  ;;  %v754_v31 = vrot.slane %v1599_v43, 2  ;;  %v673_v2 = vrot.slane %v1599_v43, 1  ;;  %v834_v45 = vrot.slane %v1596_v42, 4 }
  0x35   : > { %v916_v46 = vrot.slane %v1596_v42, 5  ;;  %v753_v47 = vsel %vm309_vm3, %v752_v9, %v751_v21  ;;  %v672_v48 = vsel %vm309_vm3, %v671_v10, %v670_v22  ;;  %v833_v49 = vsel %vm306_vm2, %v832_v13, %v831_v12 }
  0x36   : > { %v915_v50 = vsel %vm306_vm2, %v914_v15, %v913_v14  ;;  %v1734_v56 = vsel %vm312_vm4, %v512_v17, %v511_v27  ;;  %v1741_v5 = vsel %vm312_vm4, %v1599_v43, %v592_v30  ;;  %v836_v6 = vrot.slane %v1599_v43, 3 }
  0x37   : > { %v918_v8 = vrot.slane %v1599_v43, 4  ;;  %v1746_v9 = vsel %vm312_vm4, %v754_v31, %v753_v47  ;;  %v1749_v10 = vsel %vm312_vm4, %v673_v2, %v672_v48  ;;  %v835_v12 = vsel %vm309_vm3, %v834_v45, %v833_v49 }
  0x38   : > { %v917_v13 = vsel %vm309_vm3, %v916_v46, %v915_v50  ;;  %v2452_v17 = vmov 0.0   ;;  %v1774_v47 = vsel %vm312_vm4, %v836_v6, %v835_v12  ;;  %vm989_vm0 = vcmask 916480  }
  0x39   : > { %v1754_v21 = vrot.slane %v2452_v17, 4  ;;  %v1757_v22 = vrot.slane %v2452_v17, 3  ;;  %v1760_v27 = vrot.slane %v2452_v17, 2  ;;  %v1763_v30 = vrot.slane %v2452_v17, 5 }
  0x3a   : > { %v1777_v48 = vrot.slane %v2452_v17, 6  ;;  %v1780_v49 = vsel %vm312_vm4, %v918_v8, %v917_v13  ;;  %v1783_v50 = vrot.slane %v2452_v17, 7  ;;  %vm996_vm1 = vcmask 326656  }
  0x8c   : > { %v1313_v14 = vpop.permute.xlu1 %1312  ;;  %v1303_v15 = vpop.permute.xlu0 %1302 }
  0x8d   : > { %v1765_v31 = vunpack.i.h.bf16 %v1313_v14  ;;  %v1767_v2 = vunpack.i.l.bf16 %v1313_v14  ;;  %v1769_v45 = vunpack.i.h.bf16 %v1303_v15  ;;  %v1771_v46 = vunpack.i.l.bf16 %v1303_v15 }
  0x8f   : > { %v472_v14 = vrot.slane %v1767_v2, 6  ;;  %v474_v60 = vrot.slane %v1765_v31, 5  ;;  %v480_v15 = vrot.slane %v1771_v46, 2  ;;  %v481_v59 = vrot.slane %v1769_v45, 1 }
  0x90   : > { %v1308_v58 = vpop.permute.xlu0 %1307  ;;  %v392_v12 = vrot.slane %v1767_v2, 5  ;;  %v394_v25 = vrot.slane %v1765_v31, 4  ;;  %v400_v8 = vrot.slane %v1771_v46, 1  ;;  %v633_v13 = vsel %vm315_vm5, %v1767_v2, %v1621_v57 }
  0x91   : > { %v1318_v6 = vpop.permute.xlu1 %1317  ;;  %v1795_v24 = vunpack.i.h.bf16 %v1308_v58  ;;  %v1797_v16 = vunpack.i.l.bf16 %v1308_v58  ;;  %v473_v61 = vsel %vm315_vm5, %v472_v14, %v1591_v40  ;;  %v482_v55 = vsel %vm306_vm2, %v481_v59, %v480_v15 }
  0x92   : > { %v1799_v17 = vunpack.i.h.bf16 %v1318_v6  ;;  %v1801_v62 = vunpack.i.l.bf16 %v1318_v6  ;;  %v393_v54 = vsel %vm315_vm5, %v392_v12, %v1613_v51  ;;  %v401_v57 = vsel %vm306_vm2, %v1769_v45, %v400_v8 }
  0x93   : > { %v475_v53 = vsel %vm318_vm6, %v474_v60, %v473_v61  ;;  %v483_v6 = vsel %vm309_vm3, %v1797_v16, %v482_v55  ;;  %v484_v52 = vrot.slane %v1795_v24, 7  ;;  %v395_v40 = vsel %vm318_vm6, %v394_v25, %v393_v54 }
  0x94   : > { %v476_v58 = vrot.slane %v1799_v17, 4  ;;  %v1323_v41 = vpop.permute.xlu0 %1322  ;;  %v396_v59 = vrot.slane %v1799_v17, 3  ;;  %v402_v51 = vrot.slane %v1797_v16, 7  ;;  %v404_v14 = vrot.slane %v1795_v24, 6 }
  0x95   : > { %v1328_v44 = vpop.permute.xlu1 %1327  ;;  %v1819_v15 = vunpack.i.h.bf16 %v1323_v41  ;;  %v1821_v61 = vunpack.i.l.bf16 %v1323_v41  ;;  %v485_v8 = vsel %vm312_vm4, %v484_v52, %v483_v6 }
  0x96   : > { %v1823_v60 = vunpack.i.h.bf16 %v1328_v44  ;;  %v1825_v12 = vunpack.i.l.bf16 %v1328_v44  ;;  %v477_v55 = vsel %vm321_vm7, %v476_v58, %v475_v53  ;;  %v397_v54 = vsel %vm321_vm7, %v396_v59, %v395_v40 }
  0x97   : > { %v403_v25 = vsel %vm309_vm3, %v402_v51, %v401_v57  ;;  %v487_v38 = vsel %vm315_vm5, %v486_v33, %v485_v8  ;;  %v634_v57 = vrot.slane %v1765_v31, 7  ;;  %v636_v58 = vrot.slane %v1799_v17, 6 }
  0x98   : > { %v478_v39 = vrot.slane %v1825_v12, 3  ;;  %v398_v41 = vrot.slane %v1825_v12, 2  ;;  %v405_v37 = vsel %vm312_vm4, %v404_v14, %v403_v25  ;;  %v1333_v44 = vpop.permute.xlu0 %1332  ;;  %v489_v52 = vsel %vm318_vm6, %v488_v1, %v487_v38 }
  0x99   : > { %v1338_v36 = vpop.permute.xlu1 %1337  ;;  %v407_v53 = vsel %vm315_vm5, %v406_v34, %v405_v37  ;;  %v1845_v6 = vunpack.i.h.bf16 %v1333_v44  ;;  %v1847_v33 = vunpack.i.l.bf16 %v1333_v44  ;;  %v491_v1 = vsel %vm321_vm7, %v490_v0, %v489_v52 }
  0x9a   : > { %v1849_v40 = vunpack.i.h.bf16 %v1338_v36  ;;  %v1851_v59 = vunpack.i.l.bf16 %v1338_v36  ;;  %v479_v51 = vsel %vm324_vm8, %v478_v39, %v477_v55  ;;  %v399_v34 = vsel %vm324_vm8, %v398_v41, %v397_v54 }
  0x9b   : > { %v409_v37 = vsel %vm318_vm6, %v408_v35, %v407_v53  ;;  %v493_v38 = vsel %vm324_vm8, %v492_v4, %v491_v1  ;;  %v2458_v14 = vrot.slane %v1560_v23, 3  ;;  %v635_v39 = vsel %vm318_vm6, %v634_v57, %v633_v13 }
  0x9c   : > { %v638_v55 = vrot.slane %v1825_v12, 5  ;;  %v1343_v8 = vpop.permute.xlu0 %1342  ;;  %v1356_v25 = vpack.i.bf16 %v493_v38, %v479_v51  ;;  %v2459_v54 = vrot.slane %v1566_v26, 2  ;;  %v637_v35 = vsel %vm321_vm7, %v636_v58, %v635_v39 }
  0x9d   : > { %v411_v36 = vsel %vm321_vm7, %v2458_v14, %v409_v37  ;;  %v1348_v0 = vpop.permute.xlu1 %1347  ;;  %v640_v44 = vrot.slane %v1771_v46, 4  ;;  %v1874_v4 = vunpack.i.h.bf16 %v1343_v8  ;;  %v1876_v52 = vunpack.i.l.bf16 %v1343_v8 }
  0x9e   : > { %v413_v41 = vsel %vm324_vm8, %v2459_v54, %v411_v36  ;;  %v1878_v53 = vunpack.i.h.bf16 %v1348_v0  ;;  %v1880_v13 = vunpack.i.l.bf16 %v1348_v0  ;;  %1357 = vrot.lane.b32.xlu1 %v1356_v25, %s1464_s27  ;;  %v639_v51 = vsel %vm324_vm8, %v638_v55, %v637_v35 }
  0x9f   : > { %v1351_v57 = vpack.i.bf16 %v413_v41, %v399_v34  ;;  %v641_v1 = vrot.slane %v1769_v45, 3  ;;  %v643_v58 = vrot.slane %v1797_v16, 2  ;;  %v645_v37 = vrot.slane %v1795_v24, 1 }
  0xa0   : > { %v552_v38 = vrot.slane %v1767_v2, 7  ;;  %v554_v14 = vrot.slane %v1765_v31, 6  ;;  %v556_v36 = vrot.slane %v1799_v17, 5  ;;  %v558_v34 = vrot.slane %v1825_v12, 4 }
  0xa1   : > { %1352 = vrot.lane.b32.xlu0 %v1351_v57, %s1465_s28  ;;  %v642_v39 = vsel %vm306_vm2, %v641_v1, %v640_v44  ;;  %v560_v55 = vrot.slane %v1771_v46, 3  ;;  %v561_v8 = vrot.slane %v1769_v45, 2  ;;  %v563_v54 = vrot.slane %v1797_v16, 1 }
  0xa2   : > { %v644_v0 = vsel %vm309_vm3, %v643_v58, %v642_v39  ;;  %v553_v25 = vsel %vm315_vm5, %v552_v38, %v1632_v63  ;;  %v714_v41 = vrot.slane %v1767_v2, 1  ;;  %v717_v1 = vrot.slane %v1799_v17, 7 }
  0xa3   : > { %v646_v35 = vsel %vm312_vm4, %v645_v37, %v644_v0  ;;  %v555_v57 = vsel %vm318_vm6, %v554_v14, %v553_v25  ;;  %v562_v44 = vsel %vm306_vm2, %v561_v8, %v560_v55  ;;  %v2460_v38 = vrot.slane %v1555_v19, 7 }
  0xa4   : > { %v647_v43 = vsel %vm315_vm5, %v1552_v18, %v646_v35  ;;  %v557_v58 = vsel %vm321_vm7, %v556_v36, %v555_v57  ;;  %v564_v39 = vsel %vm309_vm3, %v563_v54, %v562_v44  ;;  %v715_v63 = vsel %vm315_vm5, %v714_v41, %v1638_v7 }
  0xa5   : > { %v649_v37 = vsel %vm318_vm6, %v2460_v38, %v647_v43  ;;  %v559_v14 = vsel %vm324_vm8, %v558_v34, %v557_v58  ;;  %v565_v55 = vsel %vm312_vm4, %v1795_v24, %v564_v39  ;;  %v716_v8 = vsel %vm318_vm6, %v1765_v31, %v715_v63 }
  0xa6   : > { %v2461_v0 = vrot.slane %v1560_v23, 6  ;;  %v2462_v25 = vrot.slane %v1552_v18, 7  ;;  %v718_v54 = vsel %vm321_vm7, %v717_v1, %v716_v8  ;;  %v719_v43 = vrot.slane %v1825_v12, 6 }
  0xa7   : > { %v2463_v34 = vrot.slane %v1566_v26, 5  ;;  %v2464_v35 = vrot.slane %v1555_v19, 6  ;;  %v721_v44 = vrot.slane %v1771_v46, 5  ;;  %v722_v58 = vrot.slane %v1769_v45, 4 }
  0xa8   : > { %v651_v36 = vsel %vm321_vm7, %v2461_v0, %v649_v37  ;;  %v567_v7 = vsel %vm315_vm5, %v2462_v25, %v565_v55  ;;  %v2465_v63 = vrot.slane %v1560_v23, 5  ;;  %v720_v1 = vsel %vm324_vm8, %v719_v43, %v718_v54 }
  0xa9   : > { %v653_v41 = vsel %vm324_vm8, %v2463_v34, %v651_v36  ;;  %v569_v57 = vsel %vm318_vm6, %v2464_v35, %v567_v7  ;;  %v724_v37 = vrot.slane %v1797_v16, 3  ;;  %v2466_v55 = vrot.slane %v1566_v26, 4 }
  0xaa   : > { %v1366_v39 = vpack.i.bf16 %v653_v41, %v639_v51  ;;  %v571_v38 = vsel %vm321_vm7, %v2465_v63, %v569_v57  ;;  %v723_v0 = vsel %vm306_vm2, %v722_v58, %v721_v44  ;;  %v726_v36 = vrot.slane %v1795_v24, 2 }
  0xab   : > { %v573_v8 = vsel %vm324_vm8, %v2466_v55, %v571_v38  ;;  %v414_v25 = vrot.slane %v1801_v62, 1  ;;  %v725_v7 = vsel %vm309_vm3, %v724_v37, %v723_v0  ;;  %v416_v54 = vrot.slane %v1819_v15, 7 }
  0xac   : > { %1367 = vrot.lane.b32.xlu1 %v1366_v39, %s1466_s29  ;;  %v1361_v51 = vpack.i.bf16 %v573_v8, %v559_v14  ;;  %v418_v43 = vrot.slane %v1823_v60, 6  ;;  %v727_v34 = vsel %vm312_vm4, %v726_v36, %v725_v7  ;;  %v420_v35 = vrot.slane %v1847_v33, 5 }
  0xad   : > { %v415_v41 = vsel %vm306_vm2, %v1821_v61, %v414_v25  ;;  %v422_v57 = vrot.slane %v1845_v6, 4  ;;  %v2467_v14 = vrot.slane %v1552_v18, 1  ;;  %v424_v39 = vrot.slane %v1876_v52, 3 }
  0xae   : > { %1362 = vrot.lane.b32.xlu0 %v1361_v51, %s1467_s30  ;;  %v417_v58 = vsel %vm309_vm3, %v416_v54, %v415_v41  ;;  %v426_v63 = vrot.slane %v1874_v4, 2  ;;  %v434_v55 = vrot.slane %v1851_v59, 5  ;;  %v436_v8 = vrot.slane %v1849_v40, 4 }
  0xaf   : > { %v729_v44 = vsel %vm315_vm5, %v2467_v14, %v727_v34  ;;  %v419_v37 = vsel %vm312_vm4, %v418_v43, %v417_v58  ;;  %v2468_v0 = vrot.slane %v1560_v23, 7  ;;  %v438_v51 = vrot.slane %v1880_v13, 3 }
  0xb0   : > { %v730_v38 = vsel %vm318_vm6, %v1555_v19, %v729_v44  ;;  %v421_v25 = vsel %vm315_vm5, %v420_v35, %v419_v37  ;;  %v440_v7 = vrot.slane %v1878_v53, 2  ;;  %v2469_v54 = vrot.slane %v1566_v26, 6 }
  0xb1   : > { %v732_v36 = vsel %vm321_vm7, %v2468_v0, %v730_v38  ;;  %v423_v43 = vsel %vm318_vm6, %v422_v57, %v421_v25  ;;  %v435_v41 = vsel %vm315_vm5, %v434_v55, %v1705_v3  ;;  %v2470_v14 = vmov 0.0  }
  0xb2   : > { %v734_v34 = vsel %vm324_vm8, %v2469_v54, %v732_v36  ;;  %v1979_v44 = vrot.slane %v2470_v14, 1  ;;  %v425_v38 = vsel %vm321_vm7, %v424_v39, %v423_v43  ;;  %v437_v35 = vsel %vm318_vm6, %v436_v8, %v435_v41  ;;  %1239 = vmatprep.mubr.msk.f32.mxu0 %vm1472_vm9, %v2470_v14 }
  0xb3   : > { %v1371_v58 = vpack.i.bf16 %v734_v34, %v720_v1  ;;  %v796_v37 = vrot.slane %v1767_v2, 2  ;;  %v427_v0 = vsel %vm324_vm8, %v426_v63, %v425_v38  ;;  %v439_v29 = vsel %vm321_vm7, %v438_v51, %v437_v35 }
  0xb4   : > { %v798_v36 = vrot.slane %v1765_v31, 1  ;;  %v801_v57 = vrot.slane %v1825_v12, 7  ;;  %v441_v3 = vsel %vm324_vm8, %v440_v7, %v439_v29  ;;  %v803_v39 = vrot.slane %v1771_v46, 6 }
  0xb5   : > { %1372 = vrot.lane.b32.xlu1 %v1371_v58, %s1468_s4  ;;  %v797_v1 = vsel %vm315_vm5, %v796_v37, %v1648_v11  ;;  %v804_v55 = vrot.slane %v1769_v45, 5  ;;  %v1386_v8 = vpack.i.bf16 %v441_v3, %v427_v0  ;;  %v806_v25 = vrot.slane %v1797_v16, 4 }
  0xb6   : > { %v799_v63 = vsel %vm318_vm6, %v798_v36, %v797_v1  ;;  %v808_v51 = vrot.slane %v1795_v24, 3  ;;  %v494_v29 = vrot.slane %v1801_v62, 2  ;;  %v495_v11 = vrot.slane %v1821_v61, 1 }
  0xb7   : > { %v800_v54 = vsel %vm321_vm7, %v1799_v17, %v799_v63  ;;  %v805_v34 = vsel %vm306_vm2, %v804_v55, %v803_v39  ;;  %1387 = vrot.lane.b32.xlu0 %v1386_v8, %s1465_s28  ;;  %v498_v41 = vrot.slane %v1823_v60, 7  ;;  %v500_v58 = vrot.slane %v1847_v33, 6 }
  0xb8   : > { %v802_v7 = vsel %vm324_vm8, %v801_v57, %v800_v54  ;;  %v807_v43 = vsel %vm309_vm3, %v806_v25, %v805_v34  ;;  %v496_v35 = vsel %vm306_vm2, %v495_v11, %v494_v29  ;;  %v502_v37 = vrot.slane %v1845_v6, 5 }
  0xb9   : > { %v809_v38 = vsel %vm312_vm4, %v808_v51, %v807_v43  ;;  %v504_v0 = vrot.slane %v1876_v52, 4  ;;  %v2471_v36 = vrot.slane %v1552_v18, 2  ;;  %v497_v57 = vsel %vm309_vm3, %v1819_v15, %v496_v35 }
  0xba   : > { %v506_v1 = vrot.slane %v1874_v4, 3  ;;  %v514_v39 = vrot.slane %v1851_v59, 6  ;;  %v2472_v55 = vrot.slane %v1555_v19, 1  ;;  %v499_v63 = vsel %vm312_vm4, %v498_v41, %v497_v57 }
  0xbb   : > { %v811_v3 = vsel %vm315_vm5, %v2471_v36, %v809_v38  ;;  %v516_v25 = vrot.slane %v1849_v40, 5  ;;  %v518_v51 = vrot.slane %v1880_v13, 4  ;;  %v501_v34 = vsel %vm315_vm5, %v500_v58, %v499_v63 }
  0xbc   : > { %v813_v8 = vsel %vm318_vm6, %v2472_v55, %v811_v3  ;;  %v515_v29 = vsel %vm315_vm5, %v514_v39, %v1734_v56  ;;  %v520_v11 = vrot.slane %v1878_v53, 3  ;;  %v2473_v43 = vrot.slane %v1566_v26, 7 }
  0xbd   : > { %v814_v54 = vsel %vm321_vm7, %v1560_v23, %v813_v8  ;;  %v503_v41 = vsel %vm318_vm6, %v502_v37, %v501_v34  ;;  %v517_v35 = vsel %vm318_vm6, %v516_v25, %v515_v29  ;;  %v878_v36 = vrot.slane %v1767_v2, 3 }
  0xbe   : > { %v816_v38 = vsel %vm324_vm8, %v2473_v43, %v814_v54  ;;  %v505_v57 = vsel %vm321_vm7, %v504_v0, %v503_v41  ;;  %v519_v58 = vsel %vm321_vm7, %v518_v51, %v517_v35  ;;  %v880_v55 = vrot.slane %v1765_v31, 2 }
  0xbf   : > { %v1376_v3 = vpack.i.bf16 %v816_v38, %v802_v7  ;;  %v507_v56 = vsel %vm324_vm8, %v506_v1, %v505_v57  ;;  %v521_v39 = vsel %vm324_vm8, %v520_v11, %v519_v58  ;;  %v879_v8 = vsel %vm315_vm5, %v878_v36, %v1661_v20 }
  0xc0   : > { %v882_v37 = vrot.slane %v1799_v17, 1  ;;  %v1391_v63 = vpack.i.bf16 %v521_v39, %v507_v56  ;;  %v881_v7 = vsel %vm318_vm6, %v880_v55, %v879_v8  ;;  %v885_v0 = vrot.slane %v1771_v46, 7 }
  0xc1   : > { %1377 = vrot.lane.b32.xlu1 %v1376_v3, %s1469_s5  ;;  %v886_v25 = vrot.slane %v1769_v45, 6  ;;  %v888_v1 = vrot.slane %v1797_v16, 5  ;;  %v890_v54 = vrot.slane %v1795_v24, 4  ;;  %v574_v20 = vrot.slane %v1801_v62, 3 }
  0xc2   : > { %v883_v51 = vsel %vm321_vm7, %v882_v37, %v881_v7  ;;  %1392 = vrot.lane.b32.xlu0 %v1391_v63, %s1464_s27  ;;  %v575_v11 = vrot.slane %v1821_v61, 2  ;;  %v577_v43 = vrot.slane %v1819_v15, 1  ;;  %v580_v41 = vrot.slane %v1847_v33, 7 }
  0xc3   : > { %v884_v34 = vsel %vm324_vm8, %v1825_v12, %v883_v51  ;;  %v887_v29 = vsel %vm306_vm2, %v886_v25, %v885_v0  ;;  %v582_v35 = vrot.slane %v1845_v6, 6  ;;  %v584_v36 = vrot.slane %v1876_v52, 5 }
  0xc4   : > { %v889_v38 = vsel %vm309_vm3, %v888_v1, %v887_v29  ;;  %v576_v57 = vsel %vm306_vm2, %v575_v11, %v574_v20  ;;  %v586_v58 = vrot.slane %v1874_v4, 4  ;;  %v594_v55 = vrot.slane %v1851_v59, 7 }
  0xc5   : > { %v891_v3 = vsel %vm312_vm4, %v890_v54, %v889_v38  ;;  %v2474_v56 = vrot.slane %v1552_v18, 3  ;;  %v578_v8 = vsel %vm309_vm3, %v577_v43, %v576_v57  ;;  %v596_v37 = vrot.slane %v1849_v40, 6 }
  0xc6   : > { %v598_v63 = vrot.slane %v1880_v13, 5  ;;  %v2475_v7 = vrot.slane %v1555_v19, 2  ;;  %v579_v25 = vsel %vm312_vm4, %v1823_v60, %v578_v8  ;;  %v595_v51 = vsel %vm315_vm5, %v594_v55, %v1741_v5  ;;  %v2094_v8 = vpop.permute.xlu0 %296 }
  0xc7   : > { %v893_v39 = vsel %vm315_vm5, %v2474_v56, %v891_v3  ;;  %v600_v1 = vrot.slane %v1878_v53, 4  ;;  %v2476_v54 = vrot.slane %v1560_v23, 1  ;;  %v581_v29 = vsel %vm315_vm5, %v580_v41, %v579_v25 }
  0xc8   : > { %v895_v0 = vsel %vm318_vm6, %v2475_v7, %v893_v39  ;;  %v597_v11 = vsel %vm318_vm6, %v596_v37, %v595_v51  ;;  %v735_v43 = vrot.slane %v1801_v62, 5  ;;  %v583_v3 = vsel %vm318_vm6, %v582_v35, %v581_v29 }
  0xc9   : > { %v897_v20 = vsel %vm321_vm7, %v2476_v54, %v895_v0  ;;  %v599_v57 = vsel %vm321_vm7, %v598_v63, %v597_v11  ;;  %v736_v5 = vrot.slane %v1821_v61, 4  ;;  %v585_v56 = vsel %vm321_vm7, %v584_v36, %v583_v3  ;;  %v2100_v63 = vpop.permute.xlu1 %298 }
  0xca   : > { %v898_v38 = vsel %vm324_vm8, %v1566_v26, %v897_v20  ;;  %v601_v39 = vsel %vm324_vm8, %v600_v1, %v599_v57  ;;  %v738_v41 = vrot.slane %v1819_v15, 3  ;;  %v587_v37 = vsel %vm324_vm8, %v586_v58, %v585_v56 }
  0xcb   : > { %v1381_v55 = vpack.i.bf16 %v898_v38, %v884_v34  ;;  %v737_v7 = vsel %vm306_vm2, %v736_v5, %v735_v43  ;;  %v740_v0 = vrot.slane %v1823_v60, 2  ;;  %v742_v35 = vrot.slane %v1847_v33, 1 }
  0xcc   : > { %v1396_v34 = vpack.i.bf16 %v601_v39, %v587_v37  ;;  %v739_v36 = vsel %vm309_vm3, %v738_v41, %v737_v7  ;;  %v745_v25 = vrot.slane %v1876_v52, 7  ;;  %v747_v51 = vrot.slane %v1874_v4, 6  ;;  %v2126_v7 = vpop.permute.xlu0 %300 }
  0xcd   : > { %1382 = vrot.lane.b32.xlu1 %v1381_v55, %s1470_s6  ;;  %v741_v58 = vsel %vm312_vm4, %v740_v0, %v739_v36  ;;  %v756_v1 = vrot.slane %v1851_v59, 1  ;;  %v759_v54 = vrot.slane %v1880_v13, 7  ;;  %v761_v20 = vrot.slane %v1878_v53, 6  ;;  %v2132_v36 = vpop.permute.xlu1 %302 }
  0xce   : > { %1397 = vrot.lane.b32.xlu0 %v1396_v34, %s1467_s30  ;;  %v743_v29 = vsel %vm315_vm5, %v742_v35, %v741_v58  ;;  %v654_v11 = vrot.slane %v1801_v62, 4  ;;  %v655_v43 = vrot.slane %v1821_v61, 3  ;;  %v657_v38 = vrot.slane %v1819_v15, 2 }
  0xcf   : > { %v744_v3 = vsel %vm318_vm6, %v1845_v6, %v743_v29  ;;  %v757_v57 = vsel %vm315_vm5, %v756_v1, %v1746_v9  ;;  %v659_v5 = vrot.slane %v1823_v60, 1  ;;  %v662_v55 = vrot.slane %v1845_v6, 7 }
  0xd0   : > { %v746_v56 = vsel %vm321_vm7, %v745_v25, %v744_v3  ;;  %v758_v39 = vsel %vm318_vm6, %v1849_v40, %v757_v57  ;;  %v656_v41 = vsel %vm306_vm2, %v655_v43, %v654_v11  ;;  %v664_v37 = vrot.slane %v1876_v52, 6 }
  0xd1   : > { %v748_v0 = vsel %vm324_vm8, %v747_v51, %v746_v56  ;;  %v760_v35 = vsel %vm321_vm7, %v759_v54, %v758_v39  ;;  %v658_v9 = vsel %vm309_vm3, %v657_v38, %v656_v41  ;;  %v666_v34 = vrot.slane %v1874_v4, 5 }
  0xd2   : > { %v762_v25 = vsel %vm324_vm8, %v761_v20, %v760_v35  ;;  %v660_v58 = vsel %vm312_vm4, %v659_v5, %v658_v9  ;;  %v675_v1 = vsel %vm315_vm5, %v1851_v59, %v1749_v10  ;;  %v676_v29 = vrot.slane %v1849_v40, 7 }
  0xd3   : > { %v1406_v11 = vpack.i.bf16 %v762_v25, %v748_v0  ;;  %v661_v51 = vsel %vm315_vm5, %v1847_v33, %v660_v58  ;;  %v678_v54 = vrot.slane %v1880_v13, 6  ;;  %v680_v43 = vrot.slane %v1878_v53, 5 }
  0xd4   : > { %v663_v38 = vsel %vm318_vm6, %v662_v55, %v661_v51  ;;  %v677_v20 = vsel %vm318_vm6, %v676_v29, %v675_v1  ;;  %v442_v3 = vrot.slane %v2094_v8, 1  ;;  %v444_v57 = vrot.slane %v2126_v7, 7 }
  0xd5   : > { %1407 = vrot.lane.b32.xlu1 %v1406_v11, %s1468_s4  ;;  %v665_v10 = vsel %vm321_vm7, %v664_v37, %v663_v38  ;;  %v679_v5 = vsel %vm321_vm7, %v678_v54, %v677_v20  ;;  %v446_v56 = vrot.slane %v2132_v36, 6  ;;  %v817_v39 = vrot.slane %v1801_v62, 6 }
  0xd6   : > { %v667_v41 = vsel %vm324_vm8, %v666_v34, %v665_v10  ;;  %v681_v55 = vsel %vm324_vm8, %v680_v43, %v679_v5  ;;  %v443_v0 = vsel %vm306_vm2, %v2100_v63, %v442_v3  ;;  %v818_v35 = vrot.slane %v1821_v61, 5 }
  0xd7   : > { %v1401_v9 = vpack.i.bf16 %v681_v55, %v667_v41  ;;  %v445_v25 = vsel %vm309_vm3, %v444_v57, %v443_v0  ;;  %v820_v37 = vrot.slane %v1819_v15, 4  ;;  %v822_v58 = vrot.slane %v1823_v60, 3 }
  0xd8   : > { %v447_v1 = vsel %vm312_vm4, %v446_v56, %v445_v25  ;;  %v819_v29 = vsel %vm306_vm2, %v818_v35, %v817_v39  ;;  %v824_v34 = vrot.slane %v1847_v33, 2  ;;  %v826_v11 = vrot.slane %v1845_v6, 1 }
  0xd9   : > { %1402 = vrot.lane.b32.xlu0 %v1401_v9, %s1466_s29  ;;  %v449_v51 = vsel %vm315_vm5, %v1763_v30, %v447_v1  ;;  %v821_v54 = vsel %vm309_vm3, %v820_v37, %v819_v29  ;;  %v829_v43 = vrot.slane %v1874_v4, 7  ;;  %v838_v38 = vrot.slane %v1851_v59, 2 }
  0xda   : > { %v450_v20 = vsel %vm318_vm6, %v1754_v21, %v449_v51  ;;  %v823_v3 = vsel %vm312_vm4, %v822_v58, %v821_v54  ;;  %v840_v57 = vrot.slane %v1849_v40, 1  ;;  %v843_v10 = vrot.slane %v1878_v53, 7 }
  0xdb   : > { %v451_v5 = vsel %vm321_vm7, %v1757_v22, %v450_v20  ;;  %v825_v56 = vsel %vm315_vm5, %v824_v34, %v823_v3  ;;  %v839_v39 = vsel %vm315_vm5, %v838_v38, %v1774_v47  ;;  %v522_v41 = vrot.slane %v2094_v8, 2 }
  0xdc   : > { %v452_v55 = vsel %vm324_vm8, %v1760_v27, %v451_v5  ;;  %v827_v0 = vsel %vm318_vm6, %v826_v11, %v825_v56  ;;  %v841_v35 = vsel %vm318_vm6, %v840_v57, %v839_v39  ;;  %v523_v9 = vrot.slane %v2100_v63, 1 }
  0xdd   : > { %461 = vrot.lane.b32.xlu1 %v452_v55, %s1465_s28  ;;  %v828_v25 = vsel %vm321_vm7, %v1876_v52, %v827_v0  ;;  %v842_v37 = vsel %vm321_vm7, %v1880_v13, %v841_v35  ;;  %v526_v47 = vrot.slane %v2132_v36, 7  ;;  %v899_v58 = vrot.slane %v1801_v62, 7 }
  0xde   : > { %v830_v1 = vsel %vm324_vm8, %v829_v43, %v828_v25  ;;  %v844_v29 = vsel %vm324_vm8, %v843_v10, %v842_v37  ;;  %v524_v34 = vsel %vm306_vm2, %v523_v9, %v522_v41  ;;  %v900_v11 = vrot.slane %v1821_v61, 6 }
  0xdf   : > { %v1411_v51 = vpack.i.bf16 %v844_v29, %v830_v1  ;;  %v525_v54 = vsel %vm309_vm3, %v2126_v7, %v524_v34  ;;  %v902_v38 = vrot.slane %v1819_v15, 5  ;;  %v904_v20 = vrot.slane %v1823_v60, 4 }
  0xe0   : > { %v527_v3 = vsel %vm312_vm4, %v526_v47, %v525_v54  ;;  %v901_v57 = vsel %vm306_vm2, %v900_v11, %v899_v58  ;;  %v906_v43 = vrot.slane %v1847_v33, 3  ;;  %v908_v10 = vrot.slane %v1845_v6, 2 }
  0xe1   : > { %1412 = vrot.lane.b32.xlu0 %v1411_v51, %s1469_s5  ;;  %v529_v5 = vsel %vm315_vm5, %v1777_v48, %v527_v3  ;;  %v903_v56 = vsel %vm309_vm3, %v902_v38, %v901_v57  ;;  %v910_v39 = vrot.slane %v1876_v52, 1  ;;  %v920_v41 = vrot.slane %v1851_v59, 3 }
  0xe2   : > { %v530_v55 = vsel %vm318_vm6, %v1763_v30, %v529_v5  ;;  %v905_v0 = vsel %vm312_vm4, %v904_v20, %v903_v56  ;;  %v922_v35 = vrot.slane %v1849_v40, 2  ;;  %v924_v9 = vrot.slane %v1880_v13, 1 }
  0xe3   : > { %v531_v25 = vsel %vm321_vm7, %v1754_v21, %v530_v55  ;;  %v907_v37 = vsel %vm315_vm5, %v906_v43, %v905_v0  ;;  %v921_v47 = vsel %vm315_vm5, %v920_v41, %v1780_v49  ;;  %v682_v58 = vrot.slane %v2094_v8, 4 }
  0xe4   : > { %v532_v1 = vsel %vm324_vm8, %v1757_v22, %v531_v25  ;;  %v909_v29 = vsel %vm318_vm6, %v908_v10, %v907_v37  ;;  %v923_v34 = vsel %vm318_vm6, %v922_v35, %v921_v47  ;;  %v683_v11 = vrot.slane %v2100_v63, 3 }
  0xe5   : > { %541 = vrot.lane.b32.xlu1 %v532_v1, %s1464_s27  ;;  %v911_v51 = vsel %vm321_vm7, %v910_v39, %v909_v29  ;;  %v925_v54 = vsel %vm321_vm7, %v924_v9, %v923_v34  ;;  %v685_v38 = vrot.slane %v2126_v7, 2  ;;  %v687_v49 = vrot.slane %v2132_v36, 1 }
  0xe6   : > { %v912_v20 = vsel %vm324_vm8, %v1874_v4, %v911_v51  ;;  %v926_v3 = vsel %vm324_vm8, %v1878_v53, %v925_v54  ;;  %v684_v57 = vsel %vm306_vm2, %v683_v11, %v682_v58  ;;  %v602_v43 = vrot.slane %v2094_v8, 3 }
  0xe7   : > { %v1416_v10 = vpack.i.bf16 %v926_v3, %v912_v20  ;;  %v686_v5 = vsel %vm309_vm3, %v685_v38, %v684_v57  ;;  %v603_v56 = vrot.slane %v2100_v63, 2  ;;  %v605_v39 = vrot.slane %v2126_v7, 1 }
  0xe8   : > { %v688_v41 = vsel %vm312_vm4, %v687_v49, %v686_v5  ;;  %v845_v55 = vrot.slane %v2094_v8, 6  ;;  %v846_v0 = vrot.slane %v2100_v63, 5  ;;  %v848_v35 = vrot.slane %v2126_v7, 4 }
  0xe9   : > { %1417 = vrot.lane.b32.xlu0 %v1416_v10, %s1470_s6  ;;  %v689_v9 = vsel %vm315_vm5, 0.0, %v688_v41  ;;  %v604_v25 = vsel %vm306_vm2, %v603_v56, %v602_v43  ;;  %v850_v37 = vrot.slane %v2132_v36, 3  ;;  %v763_v47 = vrot.slane %v2094_v8, 5 }
  0xea   : > { %v690_v58 = vsel %vm318_vm6, %v1783_v50, %v689_v9  ;;  %v606_v1 = vsel %vm309_vm3, %v605_v39, %v604_v25  ;;  %v847_v29 = vsel %vm306_vm2, %v846_v0, %v845_v55  ;;  %v764_v34 = vrot.slane %v2100_v63, 4 }
  0xeb   : > { %v691_v11 = vsel %vm321_vm7, %v1777_v48, %v690_v58  ;;  %v607_v51 = vsel %vm312_vm4, %v2132_v36, %v606_v1  ;;  %v849_v54 = vsel %vm309_vm3, %v848_v35, %v847_v29  ;;  %v766_v38 = vrot.slane %v2126_v7, 3 }
  0xec   : > { %v692_v49 = vsel %vm324_vm8, %v1763_v30, %v691_v11  ;;  %v609_v20 = vsel %vm315_vm5, %v1783_v50, %v607_v51  ;;  %v851_v3 = vsel %vm312_vm4, %v850_v37, %v849_v54  ;;  %v765_v57 = vsel %vm306_vm2, %v764_v34, %v763_v47 }
  0xed   : > { %701 = vrot.lane.b32.xlu1 %v692_v49, %s1466_s29  ;;  %v610_v43 = vsel %vm318_vm6, %v1777_v48, %v609_v20  ;;  %v852_v10 = vsel %vm315_vm5, %v1760_v27, %v851_v3  ;;  %v767_v5 = vsel %vm309_vm3, %v766_v38, %v765_v57  ;;  %v768_v56 = vrot.slane %v2132_v36, 2 }
  0xee   : > { %v611_v39 = vsel %vm321_vm7, %v1763_v30, %v610_v43  ;;  %v853_v41 = vsel %vm318_vm6, %v1979_v44, %v852_v10  ;;  %v927_v55 = vrot.slane %v2094_v8, 7  ;;  %v928_v0 = vrot.slane %v2100_v63, 6 }
  0xef   : > { %v612_v35 = vsel %vm324_vm8, %v1754_v21, %v611_v39  ;;  %v854_v9 = vsel %vm321_vm7, 0.0, %v853_v41  ;;  %v769_v25 = vsel %vm312_vm4, %v768_v56, %v767_v5  ;;  %v930_v37 = vrot.slane %v2126_v7, 5 }
  0xf0   : > { %621 = vrot.lane.b32.xlu0 %v612_v35, %s1467_s30  ;;  %v855_v30 = vsel %vm324_vm8, %v1783_v50, %v854_v9  ;;  %v770_v47 = vsel %vm315_vm5, %v1979_v44, %v769_v25  ;;  %v929_v58 = vsel %vm306_vm2, %v928_v0, %v927_v55  ;;  %v932_v1 = vrot.slane %v2132_v36, 4 }
  0xf1   : > { %864 = vrot.lane.b32.xlu1 %v855_v30, %s1469_s5  ;;  %v771_v29 = vsel %vm318_vm6, 0.0, %v770_v47  ;;  %v931_v34 = vsel %vm309_vm3, %v930_v37, %v929_v58  ;;  %v1471_v57 = vmov 0.0|0.0   ;;  %v370_v43 = vrot.slane %v2126_v7, 6 }
  0xf2   : > { %v772_v11 = vsel %vm321_vm7, %v1783_v50, %v771_v29  ;;  %v933_v51 = vsel %vm312_vm4, %v932_v1, %v931_v34  ;;  %v368_v50 = vrot.slane %v2100_v63, 7  ;;  %1242 = vmatprep.subr.bf16.mxu0 %v1471_v57  ;;  %v372_v10 = vrot.slane %v2132_v36, 5 }
  0xf3   : > { %v773_v54 = vsel %vm324_vm8, %v1777_v48, %v772_v11  ;;  %v934_v38 = vsel %vm315_vm5, %v1757_v22, %v933_v51  ;;  %v326_v36 = vrot.slane %v1769_v45, 7  ;;  %v328_v41 = vrot.slane %v1797_v16, 6 }
  0xf4   : > { %782 = vrot.lane.b32.xlu0 %v773_v54, %s1468_s4  ;;  %v935_v49 = vsel %vm318_vm6, %v1760_v27, %v934_v38  ;;  %v369_v48 = vsel %vm306_vm2, %v368_v50, %v2094_v8  ;;  %v330_v0 = vrot.slane %v1795_v24, 5  ;;  %v334_v9 = vrot.slane %v1555_v19, 3 }
  0xf5   : > { %v936_v20 = vsel %vm321_vm7, %v1979_v44, %v935_v49  ;;  %v371_v5 = vsel %vm309_vm3, %v370_v43, %v369_v48  ;;  %v327_v55 = vsel %vm306_vm2, %v326_v36, %v1771_v46  ;;  %v336_v37 = vrot.slane %v1560_v23, 2 }
  0xf6   : > { %v937_v3 = vsel %vm324_vm8, 0.0, %v936_v20  ;;  %v373_v56 = vsel %vm312_vm4, %v372_v10, %v371_v5  ;;  %v317_v46 = vrot.slane %v1765_v31, 3  ;;  %v323_v47 = vrot.slane %v1825_v12, 1 }
  0xf7   : > { %v375_v63 = vsel %vm315_vm5, %v1754_v21, %v373_v56  ;;  %v329_v21 = vsel %vm309_vm3, %v328_v41, %v327_v55  ;;  %v338_v19 = vrot.slane %v1566_v26, 1 }
  0xf8   : > { %946 = vrot.lane.b32.xlu0 %v937_v3, %s1470_s6  ;;  %v377_v39 = vsel %vm318_vm6, %v1757_v22, %v375_v63  ;;  %v332_v22 = vrot.slane %v1552_v18, 4  ;;  %v320_v18 = vrot.slane %v1799_v17, 2 }
  0xf9   : > { %v379_v8 = vsel %vm321_vm7, %v1760_v27, %v377_v39  ;;  %v331_v27 = vsel %vm312_vm4, %v330_v0, %v329_v21 }
  0xfa   : > { %v2327_v7 = vsel %vm324_vm8, %v1979_v44, %v379_v8  ;;  %v314_v44 = vrot.slane %v1767_v2, 4  ;;  %v333_v45 = vsel %vm315_vm5, %v332_v22, %v331_v27 }
  0xfb   : > { %v335_v24 = vsel %vm318_vm6, %v334_v9, %v333_v45  ;;  %v354_v45 = vrot.slane %v1577_v32, 7  ;;  %v2478_v32 = vld [vmem:[#allocation3_spill] sm:$0xff] }
  0xfc   : > { %v316_v30 = vsel %vm315_vm5, %v314_v44, %v1670_v28  ;;  %v337_v1 = vsel %vm321_vm7, %v336_v37, %v335_v24  ;;  %v340_v44 = vrot.slane %v1821_v61, 7  ;;  %v342_v24 = vrot.slane %v1819_v15, 6 }
  0xfd   : > { %v319_v29 = vsel %vm318_vm6, %v317_v46, %v316_v30  ;;  %v339_v28 = vsel %vm324_vm8, %v338_v19, %v337_v1  ;;  %v356_v30 = vrot.slane %v1596_v42, 6  ;;  %v358_v61 = vrot.slane %v2478_v32, 5 }
  0xfe   : > { %v322_v34 = vsel %vm321_vm7, %v320_v18, %v319_v29  ;;  %v341_v18 = vsel %vm306_vm2, %v340_v44, %v1801_v62  ;;  %v344_v1 = vrot.slane %v1823_v60, 5  ;;  %v346_v42 = vrot.slane %v1847_v33, 4 }
  0xff   : > { %v325_v11 = vsel %vm324_vm8, %v323_v47, %v322_v34  ;;  %v2477_v47 = vld [vmem:[#allocation2_spill] sm:$0xff]  ;;  %v360_v29 = vrot.slane %v1851_v59, 4  ;;  %v364_v60 = vrot.slane %v1880_v13, 2  ;;  %v352_v59 = vrot.slane %v1874_v4, 1 }
 0x100   : > { %v355_v19 = vsel %vm306_vm2, %v354_v45, %v2477_v47  ;;  %vm1076_vm2 = vcmask 7168  }
 0x110   : > { %v1358_v35 = vpop.permute.xlu1 %1357 }
 0x111   : > { %v1360_v54 = vunpack.i.h.bf16 %v1358_v35  ;;  %v1359_v38 = vunpack.i.l.bf16 %v1358_v35 }
 0x113   : > { %v1353_v25 = vpop.permute.xlu0 %1352 }
 0x114   : > { %v1355_v2 = vunpack.i.h.bf16 %v1353_v25  ;;  %v1354_v58 = vunpack.i.l.bf16 %v1353_v25 }
 0x116   : > { %v954_v17 = vsel %vm953_vm10, %v325_v11, %v1354_v58  ;;  %v955_v26 = vsel %vm953_vm10, %v339_v28, %v1355_v2  ;;  %v343_v2 = vsel %vm309_vm3, %v342_v24, %v341_v18  ;;  %v357_v58 = vsel %vm309_vm3, %v356_v30, %v355_v19 }
 0x117   : > { %v960_v49 = vsel %vm959_vm11, %v954_v17, %v1359_v38  ;;  %v961_v20 = vsel %vm959_vm11, %v955_v26, %v1360_v54  ;;  %v345_v62 = vsel %vm312_vm4, %v344_v1, %v343_v2  ;;  %v350_v11 = vrot.slane %v1876_v52, 2 }
 0x118   : > { %v347_v34 = vsel %vm315_vm5, %v346_v42, %v345_v62  ;;  %vm1078_vm3 = vcmask 15360  }
 0x11e   : > { %v1368_v16 = vpop.permute.xlu1 %1367 }
 0x11f   : > { %v1370_v43 = vunpack.i.h.bf16 %v1368_v16  ;;  %v1369_v10 = vunpack.i.l.bf16 %v1368_v16 }
 0x120   : > { %v1363_v23 = vpop.permute.xlu0 %1362 }
 0x121   : > { %v1365_v12 = vunpack.i.h.bf16 %v1363_v23  ;;  %v1364_v51 = vunpack.i.l.bf16 %v1363_v23  ;;  %v359_v23 = vsel %vm312_vm4, %v358_v61, %v357_v58 }
 0x122   : > { %v361_v28 = vsel %vm315_vm5, %v360_v29, %v359_v23  ;;  %v995_v29 = vld [vmem:[%s2449_s1] sm:$0xff] }
 0x123   : > { %v966_v50 = vsel %vm965_vm12, %v960_v49, %v1364_v51  ;;  %v967_v48 = vsel %vm965_vm12, %v961_v20, %v1365_v12  ;;  %v366_v12 = vrot.slane %v1878_v53, 1 }
 0x124   : > { %v972_v63 = vsel %vm971_vm13, %v966_v50, %v1369_v10  ;;  %v973_v39 = vsel %vm971_vm13, %v967_v48, %v1370_v43 }
 0x127   : > { %v1373_v31 = vpop.permute.xlu1 %1372 }
 0x128   : > { %v1375_v5 = vunpack.i.h.bf16 %v1373_v31  ;;  %v1374_v56 = vunpack.i.l.bf16 %v1373_v31  ;;  %v348_v31 = vrot.slane %v1845_v6, 3 }
 0x129   : > { %v1388_v41 = vpop.permute.xlu0 %1387 }
 0x12a   : > { %v978_v0 = vsel %vm977_vm14, %v972_v63, %v1374_v56  ;;  %v979_v21 = vsel %vm977_vm14, %v973_v39, %v1375_v5  ;;  %v349_v33 = vsel %vm318_vm6, %v348_v31, %v347_v34  ;;  %v1390_v54 = vunpack.i.h.bf16 %v1388_v41 }
 0x12b   : > { %v1389_v52 = vunpack.i.l.bf16 %v1388_v41 }
 0x133   : > { %v1378_v3 = vpop.permute.xlu1 %1377 }
 0x134   : > { %v1380_v8 = vunpack.i.h.bf16 %v1378_v3  ;;  %v1379_v36 = vunpack.i.l.bf16 %v1378_v3  ;;  %v1393_v46 = vpop.permute.xlu0 %1392 }
 0x135   : > { %v1395_v38 = vunpack.i.h.bf16 %v1393_v46  ;;  %v1394_v49 = vunpack.i.l.bf16 %v1393_v46 }
 0x136   : > { %v984_v27 = vsel %vm983_vm15, %v978_v0, %v1379_v36  ;;  %v985_v9 = vsel %vm983_vm15, %v979_v21, %v1380_v8 }
 0x13f   : > { %v1383_v55 = vpop.permute.xlu1 %1382 }
 0x140   : > { %v1385_v35 = vunpack.i.h.bf16 %v1383_v55  ;;  %v1384_v22 = vunpack.i.l.bf16 %v1383_v55  ;;  %v1398_v15 = vpop.permute.xlu0 %1397 }
 0x141   : > { %v1400_v20 = vunpack.i.h.bf16 %v1398_v15  ;;  %v1399_v13 = vunpack.i.l.bf16 %v1398_v15 }
 0x142   : > { %v990_v25 = vsel %vm989_vm0, %v984_v27, %v1384_v22  ;;  %v991_v16 = vsel %vm989_vm0, %v985_v9, %v1385_v35 }
 0x143   : > { %v1243_v37 = vpack.c.bf16 %v991_v16, %v990_v25 }
 0x145   : > { %1244 = vmatpush3.bf16.msra.mxu0 %v1243_v37 }
 0x146   : > { %1245 = vmatprep.subr.bf16.mxu0 %v1471_v57  ;;  %v362_v57 = vrot.slane %v1849_v40, 3  ;;  %v351_v40 = vsel %vm321_vm7, %v350_v11, %v349_v33 }
 0x147   : > { %v1408_v6 = vpop.permute.xlu1 %1407  ;;  %v353_v3 = vsel %vm324_vm8, %v352_v59, %v351_v40 }
 0x148   : > { %v363_v26 = vsel %vm318_vm6, %v362_v57, %v361_v28  ;;  %v956_v10 = vsel %vm953_vm10, %v353_v3, %v1389_v52  ;;  %v1410_v21 = vunpack.i.h.bf16 %v1408_v6  ;;  %v1409_v35 = vunpack.i.l.bf16 %v1408_v6 }
 0x149   : > { %v365_v51 = vsel %vm321_vm7, %v364_v60, %v363_v26  ;;  %v962_v5 = vsel %vm959_vm11, %v956_v10, %v1394_v49 }
 0x14a   : > { %v367_v50 = vsel %vm324_vm8, %v366_v12, %v365_v51  ;;  %v968_v39 = vsel %vm965_vm12, %v962_v5, %v1399_v13 }
 0x14b   : > { %v1403_v17 = vpop.permute.xlu0 %1402  ;;  %v957_v53 = vsel %vm953_vm10, %v367_v50, %v1390_v54 }
 0x14c   : > { %v1405_v4 = vunpack.i.h.bf16 %v1403_v17  ;;  %v1404_v48 = vunpack.i.l.bf16 %v1403_v17  ;;  %v963_v56 = vsel %vm959_vm11, %v957_v53, %v1395_v38 }
 0x14d   : > { %v969_v8 = vsel %vm965_vm12, %v963_v56, %v1400_v20 }
 0x14e   : > { %v974_v36 = vsel %vm971_vm13, %v968_v39, %v1404_v48  ;;  %v975_v41 = vsel %vm971_vm13, %v969_v8, %v1405_v4 }
 0x14f   : > { %v462_v63 = vpop.permute.xlu1 %461  ;;  %v980_v27 = vsel %vm977_vm14, %v974_v36, %v1409_v35  ;;  %v981_v9 = vsel %vm977_vm14, %v975_v41, %v1410_v21 }
 0x150   : > { %v958_v18 = vsel %vm953_vm10, %v2327_v7, %v462_v63 }
 0x153   : > { %v1413_v43 = vpop.permute.xlu0 %1412 }
 0x154   : > { %v1415_v55 = vunpack.i.h.bf16 %v1413_v43  ;;  %v1414_v0 = vunpack.i.l.bf16 %v1413_v43 }
 0x156   : > { %v986_v25 = vsel %vm983_vm15, %v980_v27, %v1414_v0  ;;  %v987_v16 = vsel %vm983_vm15, %v981_v9, %v1415_v55 }
 0x157   : > { %v542_v37 = vpop.permute.xlu1 %541 }
 0x158   : > { %v964_v47 = vsel %vm959_vm11, %v958_v18, %v542_v37 }
 0x15b   : > { %v1418_v22 = vpop.permute.xlu0 %1417 }
 0x15c   : > { %v1420_v44 = vunpack.i.h.bf16 %v1418_v22  ;;  %v1419_v45 = vunpack.i.l.bf16 %v1418_v22 }
 0x15e   : > { %v992_v46 = vsel %vm989_vm0, %v986_v25, %v1419_v45  ;;  %v993_v24 = vsel %vm989_vm0, %v987_v16, %v1420_v44 }
 0x15f   : > { %v1246_v30 = vpack.c.bf16 %v993_v24, %v992_v46  ;;  %v702_v32 = vpop.permute.xlu1 %701 }
 0x161   : > { %1247 = vmatpush3.bf16.msra.mxu0 %v1246_v30 }
 0x162   : > { %v622_v19 = vpop.permute.xlu0 %621  ;;  %1237 = vmatprep.subr.mxu0 %v2470_v14 }
 0x163   : > { %v970_v61 = vsel %vm965_vm12, %v964_v47, %v622_v19  ;;  %v865_v15 = vpop.permute.xlu1 %864 }
 0x164   : > { %v976_v2 = vsel %vm971_vm13, %v970_v61, %v702_v32 }
 0x166   : > { %v783_v58 = vpop.permute.xlu0 %782 }
 0x167   : > { %v982_v1 = vsel %vm977_vm14, %v976_v2, %v783_v58 }
 0x168   : > { %v988_v7 = vsel %vm983_vm15, %v982_v1, %v865_v15 }
 0x16a   : > { %v947_v42 = vpop.permute.xlu0 %946 }
 0x16b   : > { %v994_v14 = vsel %vm989_vm0, %v988_v7, %v947_v42 }
 0x16c   : > { %1238 = vmatpush3.msra.mxu0 %v994_v14 }
 0x16d   : > { %1240 = vmatmul.mubr.msk.f32.vlgmr.msra.gmra.mrb[0].mxu0 %vm996_vm1, %v995_v29 }
 0x240   : > { %v1066_v62 = vpop.f32.mrb[0].mxu0 }
 0x241   : > { %1070 = vst [vmem:[%s203_s21] sm:$0xff] %v1066_v62  ;;  %1071 = vadd.xlane.f32.xlu1 %v1066_v62  ;;  %v1241_v23 = vpop.f32.mrb[1].mxu0  ;;  %v1073_v31 = vmul.f32 %v1066_v62, %v1066_v62 }
 0x243   : > { %1074 = vadd.xlane.f32.xlu0 %v1073_v31 }
 0x2ce   : > { %v1072_v57 = vpop.xlane.xlu1 %1071 }
 0x2d0   : > { %v1075_v34 = vpop.xlane.xlu0 %1074 }
 0x2d1   : > { %v1077_v11 = vsel %vm1076_vm2, %v1072_v57, %v1075_v34 }
 0x2d2   : > { %1079 = vst.msk [vmem:[%s211_s24] sm:$0xff] %vm1078_vm3, %v1077_v11 }
 0x2d3 PF: > { %s14_s16 = sadd.s32 1, %s1459_s16   ;;  %s2479_s12 = smov %s1451_s14 }
 0x2d4   : > { %p11_p7 = scmp.ge.s32.totalorder %s14_s16, 6   ;;  %s2480_s13 = smov %s1455_s15 }
 0x2d5   : > { %s2481_s14 = smov %s2484_s17  ;;  %s2482_s15 = smov %s2488_s18 }
 0x2d6   :  { %13 = sbr.rel (!%p11_p7) target bundleno = 3 (0x3), region = 71 }

</bundles_post_ra>
